<compile_context>
chip_gen: v5e
topology: v5e:2x2
jax: 0.10.0
libtpu: 0.0.40
codegen_flags: <defaults>
</compile_context>

<pallas_src>
import re

import jax
import jax.numpy as jnp
from jax.experimental import pallas as pl
from jax.experimental.pallas import tpu as pltpu


# --------------------------------------------------------------------------
# Hardware introspection (generation-aware tiling / VMEM budgeting).
# --------------------------------------------------------------------------
def _tpu_vmem_and_generation():
    """Returns (physical VMEM bytes per core, TPU generation int)."""
    gen = 0
    try:
        kind = jax.devices()[0].device_kind.lower()
        m = re.search(r"v(\d+)", kind)
        if m:
            gen = int(m.group(1))
    except Exception:
        pass
    vmem = None
    try:
        vmem = int(pltpu.get_tpu_info().vmem_capacity_bytes)
    except Exception:
        vmem = None
    if not vmem or vmem <= 0:
        vmem = (64 << 20) if gen >= 7 else (128 << 20)
    return vmem, gen


def _supports_buffered():
    if not hasattr(pl, "Buffered"):
        return False
    try:
        pl.BlockSpec((8, 128), lambda i: (0, 0), pipeline_mode=pl.Buffered(1))
        return True
    except Exception:
        return False


_HAS_BUFFERED = _supports_buffered()


def _bspec(block_shape, index_map, buffers=None):
    """BlockSpec with optional reduced pipeline buffer count (VMEM saving)."""
    if buffers is not None and _HAS_BUFFERED:
        try:
            return pl.BlockSpec(block_shape, index_map,
                                pipeline_mode=pl.Buffered(buffers))
        except Exception:
            pass
    return pl.BlockSpec(block_shape, index_map)


def _pick_col_tile(N, C, gen, vmem_cap):
    """Lane-dense column tile; generation- and VMEM-aware."""
    def live_bytes(t):
        return (2 * C * N * 2        # resident bf16 xb + h blocks
                + 3 * N * t * 4      # f32 score / exp temporaries
                + 4 * C * t * 4      # out + residual tiles (double-buffered)
                + C * C * 2)         # Wqk
    budget = 0.6 * vmem_cap
    # Small problems: take the whole row range -> collapses the column axis
    # (grid = (B, 1)), so grid-step overhead doesn't dominate.
    if N <= 2048 and live_bytes(N) <= budget:
        return N
    prefs = (256, 512, 128) if gen >= 7 else (512, 256, 128)
    for t in prefs:
        if N % t == 0 and live_bytes(t) <= budget:
            return t
    for t in (128, 256, 512):
        if N % t == 0:
            return t
    return N


# --------------------------------------------------------------------------
# Kernel
# --------------------------------------------------------------------------
def _make_kernel(use_bf16_exp):
    def kernel(xb_ref, hb_ref, wqk_ref, bqk_ref, xres_ref, gamma_ref, o_ref):
        tj = o_ref.shape[-1]
        start = pl.multiple_of(pl.program_id(1) * tj, tj)

        xj_b = xb_ref[:, pl.ds(start, tj)]                       # (C, tj) bf16

        # u[:, J] = Wqk @ x[:, J] + bqk   (== Wq^T (Wk x_J + bk); bq cancels)
        u_j = jnp.dot(wqk_ref[...], xj_b,
                      preferred_element_type=jnp.float32) + bqk_ref[...]

        # s[:, J] = x^T u[:, J] -> (N, tj); contraction over the full C depth.
        s = jax.lax.dot_general(xb_ref[...], u_j.astype(jnp.bfloat16),
                                (((0,), (0,)), ((), ())),
                                preferred_element_type=jnp.float32)

        # Softmax over rows (== torch softmax(dim=1)); exact, full rows here.
        s_max = jnp.max(s, axis=0, keepdims=True)
        if use_bf16_exp:
            # v6e/v7x: bf16 EUP exp (~2x transcendental throughput); p feeds
            # the MXU as bf16 anyway; column sum accumulates in f32.
            p = jnp.exp((s - s_max).astype(jnp.bfloat16))
            denom = jnp.sum(p, axis=0, keepdims=True, dtype=jnp.float32)
            p_b = p
        else:
            p = jnp.exp(s - s_max)
            denom = jnp.sum(p, axis=0, keepdims=True)
            p_b = p.astype(jnp.bfloat16)

        # att[:, J] = h @ p[:, J]; softmax denominator (and gamma) folded in
        # AFTER the matmul: C*tj multiplies instead of N*tj, no beta temp.
        att = jnp.dot(hb_ref[...], p_b, preferred_element_type=jnp.float32)
        scale = gamma_ref[0] * pl.reciprocal(denom, approx=True)  # (1, tj)
        o_ref[...] = (att * scale + xres_ref[...]).astype(o_ref.dtype)
    return kernel


# --------------------------------------------------------------------------
# Wrapper
# --------------------------------------------------------------------------
def self_attention_pallas(x, wq, bq, wk, bk, wv, bv, gamma, *, col_tile=None):
    """x: (B, C, H, W) float32. wq/wk: (C//8, C), wv: (C, C), biases 1-D.

    `bq` is accepted for interface parity but cancels exactly inside the
    softmax (its contribution is constant along the softmax axis).
    """
    del bq
    B, C, H, W = x.shape
    N = H * W
    x_flat = x.reshape(B, C, N).astype(jnp.float32)

    vmem_cap, gen = _tpu_vmem_and_generation()
    tj = int(col_tile) if col_tile is not None else _pick_col_tile(N, C, gen, vmem_cap)
    assert N % tj == 0, (N, tj)

    wq = wq.astype(jnp.float32)
    wk = wk.astype(jnp.float32)
    # Fused query/key projection (exact w.r.t. the softmax).
    wqk = jnp.dot(wq.T, wk).astype(jnp.bfloat16)                  # (C, C)
    bqk = jnp.dot(wq.T, bk.astype(jnp.float32)).reshape(C, 1)     # (C, 1) f32
    gamma_arr = jnp.asarray(gamma, dtype=jnp.float32).reshape(1,)

    # Wrapper precompute (plain XLA, once): bf16 x and h = Wv x + bv.
    xb = x_flat.astype(jnp.bfloat16)                              # (B, C, N)
    h = (jnp.einsum('oc,bcn->bon', wv.astype(jnp.float32), x_flat)
         + bv.astype(jnp.float32)[None, :, None])
    hb = h.astype(jnp.bfloat16)                                   # (B, C, N)

    # Itemized VMEM estimate (no double hedge), capped below physical VMEM.
    big_buf = 1 if _HAS_BUFFERED else 2
    est_vmem = (big_buf * 2 * C * N * 2          # xb + hb (bf16, per batch)
                + big_buf * (C * C * 2 + C * 4)  # Wqk + bqk
                + 2 * C * tj * 4                 # residual x tile (dbl-buffered)
                + 2 * C * tj * 4                 # output tile (dbl-buffered)
                + 3 * N * tj * 4                 # score / exp temporaries
                + C * tj * 4)                    # att accumulator
    vmem_limit = min(est_vmem + (8 << 20), int(0.85 * vmem_cap))
    vmem_limit = int(max(vmem_limit, 16 << 20))

    kernel = _make_kernel(use_bf16_exp=(gen >= 6))

    out_flat = pl.pallas_call(
        kernel,
        out_shape=jax.ShapeDtypeStruct((B, C, N), x.dtype),
        grid_spec=pltpu.PrefetchScalarGridSpec(
            num_scalar_prefetch=0,
            grid=(B, N // tj),
            in_specs=[
                _bspec((None, C, N), lambda b, j: (b, 0, 0), buffers=1),  # xb bf16
                _bspec((None, C, N), lambda b, j: (b, 0, 0), buffers=1),  # h bf16
                _bspec((C, C), lambda b, j: (0, 0), buffers=1),           # Wqk
                _bspec((C, 1), lambda b, j: (0, 0), buffers=1),           # bqk
                pl.BlockSpec((None, C, tj), lambda b, j: (b, 0, j)),      # x (f32 residual)
                pl.BlockSpec(memory_space=pltpu.MemorySpace.SMEM),        # gamma
            ],
            out_specs=pl.BlockSpec((None, C, tj), lambda b, j: (b, 0, j)),
        ),
        compiler_params=pltpu.CompilerParams(
            dimension_semantics=("parallel", "parallel"),
            vmem_limit_bytes=vmem_limit),
    )(xb, hb, wqk, bqk, x_flat, gamma_arr)

    return out_flat.reshape(B, C, H, W)


# ----------------------- pure-JAX reference (for checking) -----------------
def self_attention_ref(x, wq, bq, wk, bk, wv, bv, gamma):
    B, C, H, W = x.shape
    xf = x.reshape(B, C, H * W)
    f = jnp.einsum('oc,bcn->bon', wq, xf) + bq[None, :, None]
    g = jnp.einsum('oc,bcn->bon', wk, xf) + bk[None, :, None]
    h = jnp.einsum('oc,bcn->bon', wv, xf) + bv[None, :, None]
    s = jnp.einsum('bci,bcj->bij', f, g)
    beta = jax.nn.softmax(s, axis=1)          # torch softmax dim=1
    o = gamma * jnp.einsum('bci,bij->bcj', h, beta) + xf
    return o.reshape(B, C, H, W)


# ----------------------- deterministic parameter setup ---------------------
def _kaiming_uniform(key, shape, fan_in, a=1.0):
    # matches nn.init.kaiming_uniform_(w, a): bound = sqrt(2/(1+a^2))*sqrt(3/fan_in)
    gain = (2.0 / (1.0 + a * a)) ** 0.5
    bound = gain * (3.0 / fan_in) ** 0.5
    return jax.random.uniform(key, shape, jnp.float32, -bound, bound)


def _spectral_normalize(w):
    # spectral_norm divides the (C_out, C_in) weight by its largest singular value
    sigma = jnp.linalg.svd(w, compute_uv=False)[0]
    return w / sigma


if __name__ == "__main__":
    B, C, H, W = 2, 32, 16, 16          # C//8 = 4, N = 256
    key = jax.random.PRNGKey(0)
    kx, kq, kk, kv, kbq, kbk, kbv = jax.random.split(key, 7)

    x = jax.random.normal(kx, (B, C, H, W), dtype=jnp.float32)

    C8 = C // 8
    wq = _spectral_normalize(_kaiming_uniform(kq, (C8, C), fan_in=C))
    wk = _spectral_normalize(_kaiming_uniform(kk, (C8, C), fan_in=C))
    wv = _spectral_normalize(_kaiming_uniform(kv, (C, C), fan_in=C))
    # The module zero-initialises the Conv1d biases; nonzero values here so the
    # fused-bias algebra (bqk = Wq^T bk) and its cancellation are exercised.
    bq = 0.3 * jax.random.normal(kbq, (C8,), dtype=jnp.float32)
    bk = 0.3 * jax.random.normal(kbk, (C8,), dtype=jnp.float32)
    bv = 0.3 * jax.random.normal(kbv, (C,), dtype=jnp.float32)
    # gamma is initialised to 0.0 in the module; nonzero so attention is tested.
    gamma = jnp.float32(0.5)

    out = self_attention_pallas(x, wq, bq, wk, bk, wv, bv, gamma)
    out = jax.block_until_ready(out)

    ref = self_attention_ref(x, wq, bq, wk, bk, wv, bv, gamma)
    assert out.shape == x.shape
    max_err = float(jnp.max(jnp.abs(out - ref)))
    # bf16 MXU operands, bf16 exp (v6e+), approx reciprocal -> looser tolerance.
    assert jnp.allclose(out, ref, atol=3e-2, rtol=3e-2), max_err

    print("KERNEL_OK")
</pallas_src>

<mosaic_0001>
module attributes {stable_mosaic.version = 11 : i64} {
  func.func @kernel(%arg0: i32, %arg1: i32, %arg2: memref<1x32x256xbf16, #tpu.memory_space<vmem>>, %arg3: memref<1x32x256xbf16, #tpu.memory_space<vmem>>, %arg4: memref<32x32xbf16, #tpu.memory_space<vmem>>, %arg5: memref<32x1xf32, #tpu.memory_space<vmem>>, %arg6: memref<1x32x256xf32, #tpu.memory_space<vmem>>, %arg7: memref<1xf32, #tpu.memory_space<smem>>, %arg8: memref<1x32x256xf32, #tpu.memory_space<vmem>>) attributes {dimension_semantics = [#tpu.dimension_semantics<parallel>, #tpu.dimension_semantics<parallel>], iteration_bounds = array<i64: 2, 1>, scalar_prefetch = 0 : i64, scratch_operands = 0 : i64, tpu.core_type = #tpu.core_type<tc>, window_params = [{pipeline_mode = #tpu.pipeline_mode<synchronous>, transform_indices = @transform_0, window_bounds = array<i64: 1, 32, 256>}, {pipeline_mode = #tpu.pipeline_mode<synchronous>, transform_indices = @transform_1, window_bounds = array<i64: 1, 32, 256>}, {pipeline_mode = #tpu.pipeline_mode<synchronous>, transform_indices = @transform_2, window_bounds = array<i64: 32, 32>}, {pipeline_mode = #tpu.pipeline_mode<synchronous>, transform_indices = @transform_3, window_bounds = array<i64: 32, 1>}, {transform_indices = @transform_4, window_bounds = array<i64: 1, 32, 256>}, {transform_indices = @transform_5, window_bounds = array<i64: 1>}, {transform_indices = @transform_6, window_bounds = array<i64: 1, 32, 256>}]} {
    %c256_i32 = arith.constant 256 : i32
    %0 = arith.muli %arg1, %c256_i32 : i32
    %1 = tpu.assume_multiple %0, 256 : i32
    %c0 = arith.constant 0 : index
    %c0_0 = arith.constant 0 : index
    %2 = arith.index_cast %1 : i32 to index
    %3 = vector.load %arg2[%c0, %c0_0, %2] : memref<1x32x256xbf16, #tpu.memory_space<vmem>>, vector<1x32x256xbf16>
    %4 = vector.shape_cast %3 : vector<1x32x256xbf16> to vector<32x256xbf16>
    %c0_1 = arith.constant 0 : index
    %c0_2 = arith.constant 0 : index
    %5 = vector.load %arg4[%c0_1, %c0_2] : memref<32x32xbf16, #tpu.memory_space<vmem>>, vector<32x32xbf16>
    %cst = arith.constant dense<0.000000e+00> : vector<32x256xf32>
    %6 = tpu.matmul %5, %4, %cst {dimension_numbers = #tpu.dot_dimension_numbers<[1], [0], [0], [1], [0, 0, 1, 1], [], []>} : vector<32x32xbf16>, vector<32x256xbf16>, vector<32x256xf32> -> vector<32x256xf32>
    %c0_3 = arith.constant 0 : index
    %c0_4 = arith.constant 0 : index
    %7 = vector.load %arg5[%c0_3, %c0_4] : memref<32x1xf32, #tpu.memory_space<vmem>>, vector<32x1xf32>
    %8 = vector.broadcast %7 : vector<32x1xf32> to vector<32x256xf32>
    %9 = arith.addf %6, %8 : vector<32x256xf32>
    %c0_5 = arith.constant 0 : index
    %c0_6 = arith.constant 0 : index
    %c0_7 = arith.constant 0 : index
    %10 = vector.load %arg2[%c0_5, %c0_6, %c0_7] : memref<1x32x256xbf16, #tpu.memory_space<vmem>>, vector<1x32x256xbf16>
    %11 = vector.shape_cast %10 : vector<1x32x256xbf16> to vector<32x256xbf16>
    %12 = arith.truncf %9 : vector<32x256xf32> to vector<32x256xbf16>
    %cst_8 = arith.constant dense<0.000000e+00> : vector<256x256xf32>
    %13 = tpu.matmul %11, %12, %cst_8 {dimension_numbers = #tpu.dot_dimension_numbers<[0], [0], [1], [1], [0, 1, 1, 1], [], []>} : vector<32x256xbf16>, vector<32x256xbf16>, vector<256x256xf32> -> vector<256x256xf32>
    %cst_9 = arith.constant dense<0xFF800000> : vector<256xf32>
    %14 = vector.multi_reduction <maximumf>, %13, %cst_9 [0] : vector<256x256xf32> to vector<256xf32>
    %15 = vector.shape_cast %14 : vector<256xf32> to vector<1x256xf32>
    %16 = vector.broadcast %15 : vector<1x256xf32> to vector<256x256xf32>
    %17 = arith.subf %13, %16 : vector<256x256xf32>
    %18 = math.exp %17 : vector<256x256xf32>
    %cst_10 = arith.constant dense<0.000000e+00> : vector<256xf32>
    %19 = vector.multi_reduction <add>, %18, %cst_10 [0] : vector<256x256xf32> to vector<256xf32>
    %20 = vector.shape_cast %19 : vector<256xf32> to vector<1x256xf32>
    %21 = arith.truncf %18 : vector<256x256xf32> to vector<256x256xbf16>
    %c0_11 = arith.constant 0 : index
    %c0_12 = arith.constant 0 : index
    %c0_13 = arith.constant 0 : index
    %22 = vector.load %arg3[%c0_11, %c0_12, %c0_13] : memref<1x32x256xbf16, #tpu.memory_space<vmem>>, vector<1x32x256xbf16>
    %23 = vector.shape_cast %22 : vector<1x32x256xbf16> to vector<32x256xbf16>
    %cst_14 = arith.constant dense<0.000000e+00> : vector<32x256xf32>
    %24 = tpu.matmul %23, %21, %cst_14 {dimension_numbers = #tpu.dot_dimension_numbers<[1], [0], [0], [1], [0, 0, 1, 1], [], []>} : vector<32x256xbf16>, vector<256x256xbf16>, vector<32x256xf32> -> vector<32x256xf32>
    %c0_15 = arith.constant 0 : index
    %25 = memref.load %arg7[%c0_15] : memref<1xf32, #tpu.memory_space<smem>>
    %26 = tpu.reciprocal %20 {approx = true} : vector<1x256xf32> -> vector<1x256xf32>
    %27 = vector.broadcast %25 : f32 to vector<1x256xf32>
    %28 = arith.mulf %27, %26 : vector<1x256xf32>
    %29 = vector.broadcast %28 : vector<1x256xf32> to vector<32x256xf32>
    %30 = arith.mulf %24, %29 : vector<32x256xf32>
    %c0_16 = arith.constant 0 : index
    %c0_17 = arith.constant 0 : index
    %c0_18 = arith.constant 0 : index
    %31 = vector.load %arg6[%c0_16, %c0_17, %c0_18] : memref<1x32x256xf32, #tpu.memory_space<vmem>>, vector<1x32x256xf32>
    %32 = vector.shape_cast %31 : vector<1x32x256xf32> to vector<32x256xf32>
    %33 = arith.addf %30, %32 : vector<32x256xf32>
    %c0_19 = arith.constant 0 : index
    %c0_20 = arith.constant 0 : index
    %c0_21 = arith.constant 0 : index
    %34 = vector.load %arg8[%c0_19, %c0_20, %c0_21] : memref<1x32x256xf32, #tpu.memory_space<vmem>>, vector<1x32x256xf32>
    %35 = vector.shape_cast %34 : vector<1x32x256xf32> to vector<32x256xf32>
    %36 = vector.shape_cast %33 : vector<32x256xf32> to vector<1x32x256xf32>
    tpu.vector_store %arg8[%c0_19, %c0_20, %c0_21], %36 {strides = array<i32>} : memref<1x32x256xf32, #tpu.memory_space<vmem>>, vector<1x32x256xf32>,
    return
  }
  func.func @transform_0(%arg0: i32, %arg1: i32) -> (i32, i32, i32) {
    %c0_i32 = arith.constant 0 : i32
    %c0_i32_0 = arith.constant 0 : i32
    %c0_i32_1 = arith.constant 0 : i32
    return %arg0, %c0_i32, %c0_i32_0 : i32, i32, i32
  }
  func.func @transform_1(%arg0: i32, %arg1: i32) -> (i32, i32, i32) {
    %c0_i32 = arith.constant 0 : i32
    %c0_i32_0 = arith.constant 0 : i32
    %c0_i32_1 = arith.constant 0 : i32
    return %arg0, %c0_i32, %c0_i32_0 : i32, i32, i32
  }
  func.func @transform_2(%arg0: i32, %arg1: i32) -> (i32, i32) {
    %c0_i32 = arith.constant 0 : i32
    %c0_i32_0 = arith.constant 0 : i32
    %c0_i32_1 = arith.constant 0 : i32
    return %c0_i32, %c0_i32_0 : i32, i32
  }
  func.func @transform_3(%arg0: i32, %arg1: i32) -> (i32, i32) {
    %c0_i32 = arith.constant 0 : i32
    %c0_i32_0 = arith.constant 0 : i32
    %c0_i32_1 = arith.constant 0 : i32
    return %c0_i32, %c0_i32_0 : i32, i32
  }
  func.func @transform_4(%arg0: i32, %arg1: i32) -> (i32, i32, i32) {
    %c0_i32 = arith.constant 0 : i32
    %c0_i32_0 = arith.constant 0 : i32
    return %arg0, %c0_i32, %arg1 : i32, i32, i32
  }
  func.func @transform_5(%arg0: i32, %arg1: i32) -> i32 {
    %c0_i32 = arith.constant 0 : i32
    %c0_i32_0 = arith.constant 0 : i32
    return %c0_i32 : i32
  }
  func.func @transform_6(%arg0: i32, %arg1: i32) -> (i32, i32, i32) {
    %c0_i32 = arith.constant 0 : i32
    %c0_i32_0 = arith.constant 0 : i32
    return %arg0, %c0_i32, %arg1 : i32, i32, i32
  }
}

</mosaic_0001>

<bundles_post_ra>
// kernel: tpu_custom_call.1
= control target key start
LH: loop header
LB: loop body
LE: loop exit
PB: predicated region body
PF: predicated region fallthrough
CT: control target
= control target key end

     0   :  { %s2758_s0 = inlined_call_operand.hbm [shape: bf16[2,32,256], index: 0, kind: input, shape index: {}]   ;;  %s2759_s1 = inlined_call_operand.hbm [shape: bf16[2,32,256], index: 1, kind: input, shape index: {}]   ;;  %s2760_s2 = inlined_call_operand.vmem [shape: bf16[32,32], index: 2, kind: input, shape index: {}]   ;;  %s2761_s3 = inlined_call_operand.vmem [shape: f32[32,1], index: 3, kind: input, shape index: {}]   ;;  %s2762_s4 = inlined_call_operand.hbm [shape: f32[2,32,256], index: 4, kind: input, shape index: {}]   ;;  %s2763_s5 = inlined_call_operand.<no memory space> [shape: f32[1], index: 5, kind: input, shape index: {}]   ;;  %s2764_s6 = inlined_call_operand.hbm [shape: f32[2,32,256], index: 6, kind: output, shape index: {}]  }
   0x1   :  { %2785 = sst [smem:[#allocation32_spill]] %s2758_s0 }
   0x2   :  { %2786 = sst [smem:[#allocation33_spill]] %s2759_s1 }
   0x3   :  { %11 = sst [smem:[#allocation2]] %s2763_s5 }
   0x4   :  { %12 = vsyncpa [#allocation4], 0 }
   0x5   :  { %13 = vsyncpa [#allocation7], 0 }
   0x6   :  { %14 = vsyncpa [#allocation5], 0 }
   0x7   :  { %16 = vsyncpa [#allocation5 + $0x1], 0  ;;  %s1950_s23 = smov 0   ;;  %s1952_s24 = smov 0  }
   0x8   :  { %s1954_s25 = smov 0   ;;  %s1956_s26 = smov 0  }
   0x9   :  { %s1958_s27 = smov 0   ;;  %s1960_s28 = smov 0  }
   0xa LB: > { %s1981_s5 = sadd.s32 4294967295, %s1901_s28   ;;  %s1372_s29 = sadd.s32 4294967294, %s1901_s28   ;;  %s1901_s28 = sphi %s1960_s28, %s22_s28   ;;  %s1897_s27 = sphi %s1958_s27, %s2842_s27   ;;  %s1893_s26 = sphi %s1956_s26, %s2841_s26   ;;  %s1889_s25 = sphi %s1954_s25, %s2840_s25   ;;  %s1885_s24 = sphi %s1952_s24, %s2839_s24   ;;  %s1881_s23 = sphi %s1950_s23, %s2838_s23  }
   0xb   : > { %p54_p0 = scmp.ne.s32.totalorder %s1885_s24, %s1881_s23  ;;  %p55_p1 = scmp.eq.s32.totalorder %s1981_s5, 0 }
   0xc   : > { %p197_p2 = scmp.eq.s32.totalorder %s1981_s5, 1  ;;  %p203_p3 = scmp.eq.s32.totalorder %s1372_s29, 1 }
   0xd   : > { %p1988_p4 = por %p55_p1, %p54_p0  ;;  %p1373_p5 = scmp.ge.s32.totalorder %s1901_s28, 1 }
   0xe   : > { %p1993_p6 = por %p203_p3, %p54_p0  ;;  %p210_p7 = scmp.lt.s32.totalorder %s1901_s28, 3 }
   0xf   : > { %s1482_s8 = sshll.u32 %s1893_s26, 5  ;;  %s2790_s0 = sld [smem:[#allocation32_spill]] }
  0x10   : > { %p1999_p8 = pnand %p1373_p5, %p210_p7  ;;  %s1903_s14 = smov [#allocation3]  }
  0x11   : > { %s226_s15 = sshll.u32 %s1903_s14, 4  ;;  %p1378_p11 = scmp.ge.s32.totalorder %s1901_s28, 2  ;;  %s227_s15 = int_to_ptr.vmem [resolvable:$true] %s226_s15 }
  0x12   : > { %p1512_p9 = pneg %p1999_p8  ;;  %s2792_s1 = sld [smem:[#allocation33_spill]] }
  0x14   : > { %p2010_p10 = pnand %p1512_p9, %p1988_p4 }
  0x15   : > { %s223_s12 = scalar_lea.hbm %s2790_s0, %s1482_s8  ;;  %s1728_s11 = scalar_lea.hbm %s2790_s0, 64 }
  0x16   : > { %s224_s13 = sshll.u32 %s223_s12, 4  ;;  %p1725_p13 = pneg %p2010_p10  ;;  %s225_s13 = int_to_ptr.hbm [resolvable:$true] %s224_s13 }
  0x17   : > { %s1721_s21 = sshra.s32 %s225_s13, 4  ;;  %s1722_s21 = int_to_ptr.hbm [resolvable:$true] %s1721_s21 }
  0x18   : > { %s240_s19 = scalar_lea.hbm %s2792_s1, %s1482_s8  ;;  %s1723_s22 = scalar_lea.hbm %s1722_s21, 32 }
  0x19   : > { %s241_s20 = sshll.u32 %s240_s19, 4  ;;  %p1724_p12 = scmp.ne.s32.totalorder %s1722_s21, %s1723_s22  ;;  %s242_s20 = int_to_ptr.hbm [resolvable:$true] %s241_s20 }
  0x1a   : > { %p1729_p3 = scmp.lt.s32.totalorder %s1722_s21, %s2790_s0  ;;  %p1730_p5 = scmp.lt.s32.totalorder %s1728_s11, %s1723_s22 }
  0x1b   : > { %p1726_p0 = pnand %p1725_p13, %p1724_p12 }
  0x1c   : > { %p1731_p7 = por %p1730_p5, %p1729_p3 }
  0x1d   : > { %p1727_p1 = pneg %p1726_p0 }
  0x1f   : > { %p1732_p9 = pnand %p1731_p7, %p1727_p1 }
  0x21   : > { %1735 = shalt.err (!%p1732_p9)
}
  0x22   : > { %s1904_s8 = smov 128   ;;  %s1905_s17 = smov 8  }
  0x23   : > { %1515 = dma.hbm_to_vmem [thread:$0]  (!%p2010_p10), %s225_s13, 512, %s227_s15, [#allocation4], %s1904_s8, %s1904_s8, %s1905_s17  }
  0x24   : > { %s1906_s18 = smov [#allocation6]   ;;  %s1751_s29 = sshra.s32 %s242_s20, 4  ;;  %s1752_s29 = int_to_ptr.hbm [resolvable:$true] %s1751_s29 }
  0x25   : > { %s243_s19 = sshll.u32 %s1906_s18, 4  ;;  %s1753_s10 = scalar_lea.hbm %s1752_s29, 32  ;;  %s244_s19 = int_to_ptr.vmem [resolvable:$true] %s243_s19 }
  0x26   : > { %p1754_p12 = scmp.ne.s32.totalorder %s1752_s29, %s1753_s10  ;;  %s1758_s11 = scalar_lea.hbm %s2792_s1, 64 }
  0x27   : > { %p1759_p1 = scmp.lt.s32.totalorder %s1752_s29, %s2792_s1  ;;  %p1760_p5 = scmp.lt.s32.totalorder %s1758_s11, %s1753_s10 }
  0x28   : > { %p1756_p0 = pnand %p1754_p12, %p1725_p13 }
  0x29   : > { %p1761_p7 = por %p1760_p5, %p1759_p1 }
  0x2a   : > { %p1757_p3 = pneg %p1756_p0 }
  0x2c   : > { %p1762_p9 = pnand %p1761_p7, %p1757_p3 }
  0x2e   : > { %1765 = shalt.err (!%p1762_p9)
}
  0x2f   : > { %1518 = dma.hbm_to_vmem [thread:$0]  (!%p2010_p10), %s242_s20, 512, %s244_s19, [#allocation7], %s1904_s8, %s1904_s8, %s1905_s17  }
  0x30   : > { %s34_s13 = sadd.s32 1, %s1897_s27  ;;  %s41_s15 = sadd.s32 1, %s1889_s25 }
  0x31   : > { %p36_p13 = scmp.ge.s32.totalorder %s34_s13, 2  ;;  %p144_p12 = scmp.ne.s32.totalorder %s1889_s25, %s1885_s24 }
  0x32   : > { %p145_p0 = scmp.eq.s32.totalorder %s1901_s28, 0  ;;  %p1527_p3 = scmp.lt.s32.totalorder %s1901_s28, 2 }
  0x33   : > { %s2844_s13 = smov (%p36_p13, %s34_s13), 0  ;;  %p2056_p5 = por %p197_p2, %p144_p12 }
  0x34   : > { %2793 = sst [smem:[#allocation14_spill]] %s2844_s13  ;;  %p2050_p1 = por %p145_p0, %p144_p12 }
  0x35   : > { %s38_s20 = ssub.s32 %s1897_s27, %s2844_s13  ;;  %s266_s8 = sand.u32 1, %s1901_s28  }
  0x36   : > { %p39_p10 = scmp.eq.s32.totalorder %s38_s20, 0  ;;  %s268_s17 = sand.u32 1, %s1889_s25  }
  0x37   : > { %s1484_s19 = sshll.u32 %s1897_s27, 6  ;;  %s1379_s10 = sshll.u32 %s268_s17, 6 }
  0x38   : > { %s2066_s29 = scalar_select %p39_p10, %s1889_s25, %s41_s15  }
  0x39   : > { %s277_s11 = scalar_lea.hbm %s2762_s4, %s1484_s19  ;;  %s270_s14 = scalar_lea.vmem [#allocation8], %s1379_s10 }
  0x3a   : > { %s278_s12 = sshll.u32 %s277_s11, 4  ;;  %s280_s0 = sshll.u32 %s270_s14, 4  ;;  %s279_s12 = int_to_ptr.hbm [resolvable:$true] %s278_s12  ;;  %s281_s0 = int_to_ptr.vmem [resolvable:$true] %s280_s0 }
  0x3b   : > { %p1520_p2 = pnand %p1527_p3, %p2050_p1  ;;  %s267_s1 = scalar_lea.sflag [#allocation4], %s266_s8 }
  0x3c   : > { %s1907_s13 = smov 256   ;;  %s1908_s20 = smov 16  }
  0x3d   : > { %1522 = dma.hbm_to_vmem [thread:$0]  (!%p1520_p2), %s279_s12, 1024, %s281_s0, %s267_s1, %s1907_s13, %s1907_s13, %s1908_s20  }
  0x3e   : > { %292 = sbr.rel (%p1999_p8) target bundleno = 912 (0x390), region = 44 }
  0x43   : > { %1864 = dma.done.wait (%p1988_p4), [#allocation4], 512  }
  0x44   : > { %1866 = vsyncadd (%p1988_p4), [#allocation4], 4294966784 }
  0x45   : > { %1868 = dma.done.wait (%p1988_p4), [#allocation7], 512  }
  0x46   : > { %1870 = vsyncadd (%p1988_p4), [#allocation7], 4294966784  ;;  %s304_s0 = sand.u32 1, %s1981_s5   ;;  %s306_s1 = sand.u32 1, %s1885_s24  }
  0x47   : > { %s2089_s9 = sshll.u32 %s306_s1, 6  ;;  %s305_s13 = scalar_lea.sflag [#allocation4], %s304_s0 }
  0x48   : > { %s2092_s15 = scalar_lea.vmem [#allocation8], %s2089_s9 }
  0x49   : > { %1872 = dma.done.wait (%p1988_p4), %s305_s13, 1024  }
  0x4a   : > { %1874 = vsyncadd (%p1988_p4), %s305_s13, 4294966272  ;;  %v1909_v0 = vmov 0   ;;  %v1491_v1 = vld [vmem:[#allocation3 + $0x4] sm:$0xf]  ;;  %v1415_v2 = vld [vmem:[#allocation3] sm:$0xf] }
  0x4b   : > { %1586 = vset.pattern.permute.xlu1 %v1909_v0  ;;  %1587 = vset.pattern.permute.xlu2 %v1909_v0  ;;  %v1417_v3 = vld [vmem:[#allocation3 + $0x8] sm:$0xf0]  ;;  %v1492_v4 = vld [vmem:[#allocation3 + $0x4] sm:$0xf0]  ;;  %v1403_v6 = vld [vmem:[#allocation3 + $0x10] sm:$0xf] }
  0x4c   : > { %v1420_v5 = vor.u32 %v1491_v1, %v1417_v3  ;;  %v1488_v7 = vld [vmem:[#allocation3 + $0x14] sm:$0xf0]  ;;  %v1416_v8 = vor.u32 %v1492_v4, %v1415_v2  ;;  %v1487_v10 = vld [vmem:[#allocation3 + $0x14] sm:$0xf]  ;;  %v1405_v11 = vld [vmem:[#allocation3 + $0x18] sm:$0xf0] }
  0x4d   : > { %v1404_v9 = vor.u32 %v1488_v7, %v1403_v6  ;;  %v1395_v12 = vld [vmem:[#allocation3] sm:$0xf]  ;;  %v1408_v13 = vor.u32 %v1487_v10, %v1405_v11  ;;  %v1486_v14 = vld [vmem:[#allocation3 + $0x4] sm:$0xf0]  ;;  %v1485_v15 = vld [vmem:[#allocation3 + $0x4] sm:$0xf] }
  0x4e   : > { %v1397_v16 = vld [vmem:[#allocation3 + $0x8] sm:$0xf0]  ;;  %481 = vxpose.binary.xlu0.c.b16.start [1/4] (short) %v1420_v5, %v1416_v8, 128  ;;  %v1396_v17 = vor.u32 %v1486_v14, %v1395_v12  ;;  %v356_v19 = vld [vmem:[%s2761_s3 + $0x10] sm:$0xff]  ;;  %v354_v20 = vld [vmem:[%s2761_s3] sm:$0xff]  ;;  %vm408_vm0 = vcmask 261120   ;;  %s2696_s20 = sld [smem:[#allocation2]] }
  0x4f   : > { %421 = vmatpush.bf16.msra.mxu0 %v1404_v9  ;;  %440 = vmatpush.bf16.msra.mxu1 %v1408_v13  ;;  %v1400_v18 = vor.u32 %v1485_v15, %v1397_v16  ;;  %v1489_v21 = vld [vmem:[%s2760_s2] sm:$0xff]  ;;  %v1493_v22 = vld [vmem:[#allocation3 + $0x14] sm:$0xf]  ;;  %v357_v23 = vld [vmem:[%s2761_s3 + $0x18] sm:$0xff]  ;;  %s2701_s0 = scalar_lea.vmem [#allocation9], %s2089_s9  ;;  %s1499_s9 = sshll.u32 %s1893_s26, 6 }
  0x50   : > { %370 = vperm.xlu1 %1586, %v356_v19   ;;  %360 = vperm.xlu2 %1587, %v354_v20   ;;  %v355_v24 = vld [vmem:[%s2761_s3 + $0x8] sm:$0xff]  ;;  %v1423_v25 = vld [vmem:[#allocation3 + $0x10] sm:$0xf]  ;;  %v1425_v26 = vld [vmem:[#allocation3 + $0x18] sm:$0xf0]  ;;  %s1255_s30 = scalar_lea.hbm %s2764_s6, %s1499_s9  ;;  %s1256_s16 = sshll.u32 %s2701_s0, 4  ;;  %s1257_s16 = int_to_ptr.vmem [resolvable:$true] %s1256_s16 }
  0x51   : > { %v1494_v27 = vld [vmem:[#allocation3 + $0x14] sm:$0xf0]  ;;  %v1428_v29 = vor.u32 %v1493_v22, %v1425_v26  ;;  %v1490_v30 = vld [vmem:[%s2760_s2 + $0x8] sm:$0xff]  ;;  %s1258_s8 = sshll.u32 %s1255_s30, 4  ;;  %s1242_s26 = scalar_lea.sflag [#allocation5], %s306_s1  ;;  %s1259_s8 = int_to_ptr.hbm [resolvable:$true] %s1258_s8 }
  0x52   : > { %v1424_v28 = vor.u32 %v1494_v27, %v1423_v25  ;;  %s1825_s17 = sshra.s32 %s1259_s8, 4  ;;  %s1831_s22 = scalar_lea.hbm %s2764_s6, 128  ;;  %s1826_s17 = int_to_ptr.hbm [resolvable:$true] %s1825_s17 }
  0x53   : > { %422 = vmatpush.bf16.msra.mxu0 %v1396_v17  ;;  %441 = vmatpush.bf16.msra.mxu1 %v1400_v18  ;;  %s1827_s19 = scalar_lea.hbm %s1826_s17, 64  ;;  %p1832_p9 = scmp.lt.s32.totalorder %s1826_s17, %s2764_s6 }
  0x54   : > { %p1828_p4 = scmp.ne.s32.totalorder %s1826_s17, %s1827_s19  ;;  %p1833_p13 = scmp.lt.s32.totalorder %s1831_s22, %s1827_s19 }
  0x56   : > { %1409 = vmatmul.msk.bf16.vlgmr.msra.gmra.mxu0 %vm408_vm0, %v1489_v21  ;;  %1411 = vmatmul.msk.bf16.vlgmr.msra.gmra.mxu1 %vm408_vm0, %v1489_v21  ;;  %p1829_p8 = pnand %p1828_p4, %p2056_p5  ;;  %p1834_p12 = por %p1833_p13, %p1832_p9 }
  0x58   : > { %375 = vperm.xlu1 %1586, %v357_v23   ;;  %365 = vperm.xlu2 %1587, %v355_v24   ;;  %p1830_p7 = pneg %p1829_p8 }
  0x5a   : > { %p1835_p0 = pnand %p1834_p12, %p1830_p7 }
  0x5e   : > { %482 = vxpose.binary.xlu0.c.b16.end [2/4] (short) %v1428_v29, %v1424_v28, 128 }
  0x66   : > { %1410 = vmatmul.msk.bf16.gmra.mxu0 %vm408_vm0, %v1490_v30  ;;  %1412 = vmatmul.msk.bf16.gmra.mxu1 %vm408_vm0, %v1490_v30 }
  0xaa   : > { %v361_v36 = vpop.permute.xlu2 %360 }
  0xb2   : > { %v366_v40 = vpop.permute.xlu2 %365 }
  0xc2   : > { %v371_v35 = vpop.permute.xlu1 %370 }
  0xc5   : > { %1588 = vset.pattern.permute.xlu0 %v1909_v0 }
  0xca   : > { %v376_v39 = vpop.permute.xlu1 %375 }
  0xd3   : > { %v424_v31 = vpop.f32.mrf.mxu0  ;;  %v443_v32 = vpop.f32.mrf.mxu1 }
  0xd4   : > { %v425_v43 = vadd.f32 %v424_v31, %v361_v36  ;;  %v444_v44 = vadd.f32 %v443_v32, %v361_v36 }
  0xdb   : > { %v426_v33 = vpop.f32.mrf.mxu0  ;;  %v445_v34 = vpop.f32.mrf.mxu1 }
  0xdc   : > { %v427_v49 = vadd.f32 %v426_v33, %v366_v40  ;;  %v446_v50 = vadd.f32 %v445_v34, %v366_v40 }
  0xde   : > { %v457_v53 = vpack.c.bf16 %v427_v49, %v425_v43  ;;  %v458_v54 = vpack.c.bf16 %v446_v50, %v444_v44 }
  0xe3   : > { %v429_v37 = vpop.f32.mrf.mxu0  ;;  %v448_v38 = vpop.f32.mrf.mxu1 }
  0xe4   : > { %v430_v41 = vadd.f32 %v429_v37, %v371_v35  ;;  %v449_v42 = vadd.f32 %v448_v38, %v371_v35 }
  0xeb   : > { %v431_v45 = vpop.f32.mrf.mxu0  ;;  %v450_v46 = vpop.f32.mrf.mxu1 }
  0xec   : > { %v432_v47 = vadd.f32 %v431_v45, %v376_v39  ;;  %v451_v48 = vadd.f32 %v450_v46, %v376_v39 }
  0xee   : > { %v459_v51 = vpack.c.bf16 %v432_v47, %v430_v41  ;;  %v460_v52 = vpack.c.bf16 %v451_v48, %v449_v42 }
  0xf0   : > { %559 = vmatpush.bf16.msrb.mxu0 %v459_v51  ;;  %648 = vmatpush.bf16.msrb.mxu1 %v460_v52 }
  0xf1   : > { %1500 = vmatpush.bf16.msra.mxu2 %v459_v51  ;;  %1502 = vmatpush.bf16.msra.mxu3 %v460_v52 }
  0xf4   : > { %560 = vmatpush.bf16.msrb.mxu0 %v457_v53  ;;  %649 = vmatpush.bf16.msrb.mxu1 %v458_v54 }
  0xf5   : > { %1501 = vmatpush.bf16.msra.mxu2 %v457_v53  ;;  %1503 = vmatpush.bf16.msra.mxu3 %v458_v54 }
  0xfa   : > { %v489_v55 = vpop.trf.xlu0 }
  0xfb   : > { %1429 = vmatmul.msk.bf16.vlgmr.msrb.gmra.mxu0 %vm408_vm0, %v489_v55  ;;  %1445 = vmatmul.msk.bf16.vlgmr.msrb.gmra.mxu1 %vm408_vm0, %v489_v55 }
 0x102   : > { %v490_v56 = vpop.trf.xlu0 }
 0x10a   : > { %v491_v57 = vpop.trf.xlu0 }
 0x10b   : > { %1430 = vmatmul.msk.bf16.gmra.mxu0 %vm408_vm0, %v491_v57  ;;  %1446 = vmatmul.msk.bf16.gmra.mxu1 %vm408_vm0, %v491_v57 }
 0x112   : > { %v492_v58 = vpop.trf.xlu0 }
 0x11a   : > { %v493_v59 = vpop.trf.xlu0 }
 0x11b   : > { %1431 = vmatmul.msk.bf16.gmra.mxu0 %vm408_vm0, %v493_v59  ;;  %1447 = vmatmul.msk.bf16.gmra.mxu1 %vm408_vm0, %v493_v59 }
 0x122   : > { %v494_v60 = vpop.trf.xlu0 }
 0x12a   : > { %v495_v61 = vpop.trf.xlu0 }
 0x12b   : > { %1432 = vmatmul.msk.bf16.gmra.mxu0 %vm408_vm0, %v495_v61  ;;  %1448 = vmatmul.msk.bf16.gmra.mxu1 %vm408_vm0, %v495_v61 }
 0x132   : > { %v496_v62 = vpop.trf.xlu0 }
 0x13a   : > { %v497_v63 = vpop.trf.xlu0 }
 0x13b   : > { %1433 = vmatmul.msk.bf16.gmra.mxu0 %vm408_vm0, %v497_v63  ;;  %1449 = vmatmul.msk.bf16.gmra.mxu1 %vm408_vm0, %v497_v63 }
 0x142   : > { %v498_v0 = vpop.trf.xlu0 }
 0x14a   : > { %v499_v1 = vpop.trf.xlu0 }
 0x14b   : > { %1434 = vmatmul.msk.bf16.vlgmr.msra.gmra.mxu2 %vm408_vm0, %v499_v1  ;;  %1450 = vmatmul.msk.bf16.vlgmr.msra.gmra.mxu3 %vm408_vm0, %v499_v1 }
 0x152   : > { %v500_v2 = vpop.trf.xlu0 }
 0x15a   : > { %v501_v3 = vpop.trf.xlu0 }
 0x15b   : > { %1435 = vmatmul.msk.bf16.gmra.mxu2 %vm408_vm0, %v501_v3  ;;  %1451 = vmatmul.msk.bf16.gmra.mxu3 %vm408_vm0, %v501_v3 }
 0x162   : > { %v502_v4 = vpop.trf.xlu0 }
 0x16a   : > { %v503_v5 = vpop.trf.xlu0 }
 0x16b   : > { %1436 = vmatmul.msk.bf16.gmra.mxu2 %vm408_vm0, %v503_v5  ;;  %1452 = vmatmul.msk.bf16.gmra.mxu3 %vm408_vm0, %v503_v5 }
 0x172   : > { %v504_v14 = vpop.trf.xlu0 }
 0x178   : > { %v2180_v21 = vpop.f32.mrf.mxu0  ;;  %v2192_v27 = vpop.f32.mrf.mxu1 }
 0x17b   : > { %1437 = vmatmul.msk.bf16.gmra.mxu2 %vm408_vm0, %v490_v56  ;;  %1453 = vmatmul.msk.bf16.gmra.mxu3 %vm408_vm0, %v490_v56 }
 0x180   : > { %v2186_v24 = vpop.f32.mrf.mxu0  ;;  %v2204_v33 = vpop.f32.mrf.mxu1 }
 0x181   : > { %2801 = vst [vmem:[#allocation20_spill] sm:$0xff] %v2204_v33 }
 0x188   : > { %v2198_v30 = vpop.f32.mrf.mxu0  ;;  %v2212_v37 = vpop.f32.mrf.mxu1 }
 0x189   : > { %2803 = vst [vmem:[#allocation22_spill] sm:$0xff] %v2212_v37 }
 0x18b   : > { %1438 = vmatmul.msk.bf16.gmra.mxu2 %vm408_vm0, %v492_v58  ;;  %1454 = vmatmul.msk.bf16.gmra.mxu3 %vm408_vm0, %v492_v58  ;;  %v731_v58 = vmax.f32 %v2180_v21, %v2198_v30 }
 0x190   : > { %v2206_v34 = vpop.f32.mrf.mxu0  ;;  %v2220_v41 = vpop.f32.mrf.mxu1 }
 0x191   : > { %2802 = vst [vmem:[#allocation21_spill] sm:$0xff] %v2206_v34  ;;  %v732_v59 = vmax.f32 %v2186_v24, %v2206_v34 }
 0x192   : > { %2805 = vst [vmem:[#allocation24_spill] sm:$0xff] %v2220_v41 }
 0x198   : > { %v2214_v38 = vpop.f32.mrf.mxu0  ;;  %v2228_v45 = vpop.f32.mrf.mxu1 }
 0x199   : > { %2804 = vst [vmem:[#allocation23_spill] sm:$0xff] %v2214_v38  ;;  %v733_v61 = vmax.f32 %v731_v58, %v2214_v38 }
 0x19b   : > { %1439 = vmatmul.msk.bf16.gmra.mxu2 %vm408_vm0, %v494_v60  ;;  %1455 = vmatmul.msk.bf16.gmra.mxu3 %vm408_vm0, %v494_v60 }
 0x1a0   : > { %v2222_v42 = vpop.f32.mrf.mxu0  ;;  %v2238_v50 = vpop.f32.mrf.mxu1 }
 0x1a1   : > { %2806 = vst [vmem:[#allocation25_spill] sm:$0xff] %v2222_v42 }
 0x1a8   : > { %v2232_v47 = vpop.f32.mrf.mxu0  ;;  %v2246_v54 = vpop.f32.mrf.mxu1 }
 0x1ab   : > { %1440 = vmatmul.msk.bf16.gmra.mxu2 %vm408_vm0, %v496_v62  ;;  %1456 = vmatmul.msk.bf16.gmra.mxu3 %vm408_vm0, %v496_v62  ;;  %v734_v62 = vmax.f32 %v732_v59, %v2222_v42 }
 0x1b0   : > { %v2240_v51 = vpop.f32.mrf.mxu0  ;;  %v2258_v60 = vpop.f32.mrf.mxu1 }
 0x1b1   : > { %2809 = vst [vmem:[#allocation28_spill] sm:$0xff] %v2240_v51  ;;  %v736_v3 = vmax.f32 %v734_v62, %v2240_v51 }
 0x1b2   : > { %2811 = vst [vmem:[#allocation30_spill] sm:$0xff] %v2258_v60 }
 0x1b8   : > { %v2248_v55 = vpop.f32.mrf.mxu0  ;;  %v2276_v38 = vpop.f32.mrf.mxu1 }
 0x1bb   : > { %1441 = vmatmul.msk.bf16.gmra.mxu2 %vm408_vm0, %v498_v0  ;;  %1457 = vmatmul.msk.bf16.gmra.mxu3 %vm408_vm0, %v498_v0 }
 0x1c0   : > { %v2262_v63 = vpop.f32.mrf.mxu0 }
 0x1c1   : > { %v738_v5 = vmax.f32 %v736_v3, %v2262_v63 }
 0x1cb   : > { %1442 = vmatmul.msk.bf16.gmra.mxu2 %vm408_vm0, %v500_v2  ;;  %1458 = vmatmul.msk.bf16.gmra.mxu3 %vm408_vm0, %v500_v2  ;;  %v735_v2 = vmax.f32 %v733_v61, %v2232_v47 }
 0x1ce   : > { %v2148_v6 = vpop.f32.mrf.mxu2  ;;  %v2150_v7 = vpop.f32.mrf.mxu3 }
 0x1d6   : > { %v2152_v8 = vpop.f32.mrf.mxu2  ;;  %v2154_v9 = vpop.f32.mrf.mxu3 }
 0x1d7   : > { %2796 = vst [vmem:[#allocation15_spill] sm:$0xff] %v2154_v9  ;;  %v740_v58 = vmax.f32 %v738_v5, %v2152_v8 }
 0x1db   : > { %1443 = vmatmul.msk.bf16.gmra.mxu2 %vm408_vm0, %v502_v4  ;;  %1459 = vmatmul.msk.bf16.gmra.mxu3 %vm408_vm0, %v502_v4  ;;  %v737_v4 = vmax.f32 %v735_v2, %v2248_v55 }
 0x1de   : > { %v2158_v10 = vpop.f32.mrf.mxu2  ;;  %v2160_v11 = vpop.f32.mrf.mxu3 }
 0x1e6   : > { %v2162_v12 = vpop.f32.mrf.mxu2  ;;  %v2164_v13 = vpop.f32.mrf.mxu3 }
 0x1e7   : > { %2797 = vst [vmem:[#allocation16_spill] sm:$0xff] %v2162_v12  ;;  %v742_v42 = vmax.f32 %v740_v58, %v2162_v12 }
 0x1e8   : > { %2798 = vst [vmem:[#allocation17_spill] sm:$0xff] %v2164_v13 }
 0x1eb   : > { %1444 = vmatmul.msk.bf16.gmra.mxu2 %vm408_vm0, %v504_v14  ;;  %1460 = vmatmul.msk.bf16.gmra.mxu3 %vm408_vm0, %v504_v14  ;;  %v739_v14 = vmax.f32 %v737_v4, %v2148_v6 }
 0x1ed   : > { %v741_v59 = vmax.f32 %v739_v14, %v2158_v10  ;;  %v769_v14 = vmax.f32 %v2204_v33, %v2220_v41 }
 0x1ee   : > { %v2168_v15 = vpop.f32.mrf.mxu2  ;;  %v2170_v16 = vpop.f32.mrf.mxu3 }
 0x1ef   : > { %v743_v61 = vmax.f32 %v741_v59, %v2168_v15 }
 0x1f6   : > { %v2172_v17 = vpop.f32.mrf.mxu2  ;;  %v2174_v18 = vpop.f32.mrf.mxu3 }
 0x1f7   : > { %v744_v62 = vmax.f32 %v742_v42, %v2172_v17  ;;  %v768_v42 = vmax.f32 %v2192_v27, %v2212_v37 }
 0x1fe   : > { %v2176_v19 = vpop.f32.mrf.mxu2  ;;  %v2178_v20 = vpop.f32.mrf.mxu3 }
 0x1ff   : > { %v745_v2 = vmax.f32 %v743_v61, %v2176_v19  ;;  %v771_v61 = vmax.f32 %v769_v14, %v2238_v50 }
 0x201   : > { %v773_v41 = vmax.f32 %v771_v61, %v2258_v60 }
 0x206   : > { %v2182_v22 = vpop.f32.mrf.mxu2  ;;  %v2184_v23 = vpop.f32.mrf.mxu3 }
 0x207   : > { %2799 = vst [vmem:[#allocation18_spill] sm:$0xff] %v2184_v23  ;;  %v746_v3 = vmax.f32 %v744_v62, %v2182_v22 }
 0x20e   : > { %v2188_v25 = vpop.f32.mrf.mxu2  ;;  %v2190_v26 = vpop.f32.mrf.mxu3 }
 0x20f   : > { %2800 = vst [vmem:[#allocation19_spill] sm:$0xff] %v2188_v25  ;;  %v747_v4 = vmax.f32 %v745_v2, %v2188_v25  ;;  %v2299_v25 = vpop.f32.mrf.mxu1 }
 0x210   : > { %2812 = vst [vmem:[#allocation31_spill] sm:$0xff] %v2299_v25  ;;  %v775_v14 = vmax.f32 %v773_v41, %v2299_v25 }
 0x216   : > { %v2194_v28 = vpop.f32.mrf.mxu2  ;;  %v2196_v29 = vpop.f32.mrf.mxu3 }
 0x217   : > { %v748_v5 = vmax.f32 %v746_v3, %v2194_v28  ;;  %v770_v3 = vmax.f32 %v768_v42, %v2228_v45  ;;  %v777_v42 = vmax.f32 %v775_v14, %v2154_v9 }
 0x219   : > { %v772_v37 = vmax.f32 %v770_v3, %v2246_v54  ;;  %v779_v3 = vmax.f32 %v777_v42, %v2164_v13 }
 0x21e   : > { %v2200_v31 = vpop.f32.mrf.mxu2  ;;  %v2202_v32 = vpop.f32.mrf.mxu3 }
 0x21f   : > { %v749_v58 = vmax.f32 %v747_v4, %v2200_v31 }
 0x226   : > { %v2208_v35 = vpop.f32.mrf.mxu2  ;;  %v2210_v36 = vpop.f32.mrf.mxu3 }
 0x227   : > { %v750_v12 = vmax.f32 %v748_v5, %v2208_v35 }
 0x22e   : > { %v2216_v39 = vpop.f32.mrf.mxu2  ;;  %v2218_v40 = vpop.f32.mrf.mxu3 }
 0x22f   : > { %v751_v62 = vmax.f32 %v749_v58, %v2216_v39 }
 0x236   : > { %v2224_v43 = vpop.f32.mrf.mxu2  ;;  %v2226_v44 = vpop.f32.mrf.mxu3 }
 0x237   : > { %2807 = vst [vmem:[#allocation26_spill] sm:$0xff] %v2224_v43  ;;  %v752_v2 = vmax.f32 %v750_v12, %v2224_v43  ;;  %v774_v43 = vmax.f32 %v772_v37, %v2276_v38  ;;  %v781_v37 = vmax.f32 %v779_v3, %v2174_v18 }
 0x238   : > { %2808 = vst [vmem:[#allocation27_spill] sm:$0xff] %v2226_v44 }
 0x23e   : > { %v2230_v46 = vpop.f32.mrf.mxu2  ;;  %v2234_v48 = vpop.f32.mrf.mxu3 }
 0x23f   : > { %v753_v4 = vmax.f32 %v751_v62, %v2230_v46 }
 0x246   : > { %v2236_v49 = vpop.f32.mrf.mxu2  ;;  %v2242_v52 = vpop.f32.mrf.mxu3 }
 0x247   : > { %2810 = vst [vmem:[#allocation29_spill] sm:$0xff] %v2242_v52  ;;  %v754_v5 = vmax.f32 %v752_v2, %v2236_v49  ;;  %v776_v2 = vmax.f32 %v774_v43, %v2150_v7 }
 0x24e   : > { %v2244_v53 = vpop.f32.mrf.mxu2  ;;  %v2250_v56 = vpop.f32.mrf.mxu3 }
 0x24f   : > { %v755_v58 = vmax.f32 %v753_v4, %v2244_v53 }
 0x256   : > { %v2252_v57 = vpop.f32.mrf.mxu2  ;;  %v2264_v0 = vpop.f32.mrf.mxu3 }
 0x257   : > { %v756_v12 = vmax.f32 %v754_v5, %v2252_v57  ;;  %v778_v5 = vmax.f32 %v776_v2, %v2160_v11 }
 0x259   : > { %v780_v14 = vmax.f32 %v778_v5, %v2170_v16 }
 0x25b   : > { %v782_v43 = vmax.f32 %v780_v14, %v2178_v20 }
 0x25e   : > { %v2266_v1 = vpop.f32.mrf.mxu2  ;;  %v2282_v51 = vpop.f32.mrf.mxu3 }
 0x25f   : > { %v757_v61 = vmax.f32 %v755_v58, %v2266_v1  ;;  %v783_v58 = vmax.f32 %v781_v37, %v2184_v23 }
 0x261   : > { %v785_v42 = vmax.f32 %v783_v58, %v2196_v29 }
 0x266   : > { %v2278_v34 = vpop.f32.mrf.mxu2  ;;  %v2305_v33 = vpop.f32.mrf.mxu3 }
 0x267   : > { %v758_v62 = vmax.f32 %v756_v12, %v2278_v34 }
 0x26e   : > { %v2292_v59 = vpop.f32.mrf.mxu2  ;;  %v2325_v9 = vpop.f32.mrf.mxu3 }
 0x26f   : > { %v759_v41 = vmax.f32 %v757_v61, %v2292_v59  ;;  %v784_v61 = vmax.f32 %v782_v43, %v2190_v26 }
 0x271   : > { %v786_v3 = vmax.f32 %v784_v61, %v2202_v32 }
 0x273   : > { %v788_v5 = vmax.f32 %v786_v3, %v2218_v40 }
 0x275   : > { %v790_v14 = vmax.f32 %v788_v5, %v2234_v48 }
 0x276   : > { %v2315_v60 = vpop.f32.mrf.mxu2 }
 0x277   : > { %v760_v4 = vmax.f32 %v758_v62, %v2315_v60  ;;  %v787_v62 = vmax.f32 %v785_v42, %v2210_v36 }
 0x279   : > { %v761_v25 = vmax.f32 %v759_v41, %v760_v4  ;;  %v789_v41 = vmax.f32 %v787_v62, %v2226_v44 }
 0x27b   : > { %v762_v12 = vrot.slane %v761_v25, 4  ;;  %v791_v37 = vmax.f32 %v789_v41, %v2242_v52 }
 0x27d   : > { %v763_v13 = vmax.f32 %v761_v25, %v762_v12  ;;  %v793_v58 = vmax.f32 %v791_v37, %v2264_v0  ;;  %v2337_v25 = vpop.f32.mrf.mxu3  ;;  %v792_v12 = vmax.f32 %v790_v14, %v2250_v56  ;;  %v2813_v37 = vld [vmem:[#allocation21_spill] sm:$0xff] }
 0x27f   : > { %v764_v2 = vrot.slane %v763_v13, 2  ;;  %v795_v43 = vmax.f32 %v793_v58, %v2305_v33  ;;  %v794_v61 = vmax.f32 %v792_v12, %v2282_v51  ;;  %v2814_v58 = vld [vmem:[#allocation23_spill] sm:$0xff] }
 0x281   : > { %v765_v4 = vmax.f32 %v763_v13, %v764_v2  ;;  %v797_v13 = vmax.f32 %v795_v43, %v2337_v25  ;;  %v796_v62 = vmax.f32 %v794_v61, %v2325_v9 }
 0x283   : > { %v766_v23 = vrot.slane %v765_v4, 1  ;;  %v798_v5 = vmax.f32 %v796_v62, %v797_v13 }
 0x285   : > { %v2341_v42 = vmax.f32 %v765_v4, %v766_v23  ;;  %v799_v61 = vrot.slane %v798_v5, 4 }
 0x287   : > { %v805_v2 = vsub.f32 %v2180_v21, %v2341_v42  ;;  %v807_v3 = vsub.f32 %v2186_v24, %v2341_v42  ;;  %v809_v41 = vsub.f32 %v2198_v30, %v2341_v42  ;;  %v811_v23 = vsub.f32 %v2813_v37, %v2341_v42  ;;  %v2815_v21 = vld [vmem:[#allocation25_spill] sm:$0xff] }
 0x288   : > { %v813_v12 = vsub.f32 %v2814_v58, %v2341_v42  ;;  %v815_v44 = vsub.f32 %v2815_v21, %v2341_v42  ;;  %v817_v30 = vsub.f32 %v2232_v47, %v2341_v42  ;;  %v800_v62 = vmax.f32 %v798_v5, %v799_v61 }
 0x289   : > { %v869_v4 = vmul.f32 1.442695, %v805_v2  ;;  %v873_v14 = vmul.f32 1.442695, %v807_v3  ;;  %v877_v43 = vmul.f32 1.442695, %v809_v41  ;;  %v821_v41 = vsub.f32 %v2248_v55, %v2341_v42 }
 0x28a   : > { %v881_v24 = vmul.f32 1.442695, %v811_v23  ;;  %v885_v13 = vmul.f32 1.442695, %v813_v12  ;;  %v2816_v2 = vld [vmem:[#allocation28_spill] sm:$0xff]  ;;  %v823_v23 = vsub.f32 %v2262_v63, %v2341_v42  ;;  %v825_v5 = vsub.f32 %v2148_v6, %v2341_v42 }
 0x28b   : > { %1589 = vpow2.f32 %v869_v4  ;;  %v819_v3 = vsub.f32 %v2816_v2, %v2341_v42  ;;  %v889_v37 = vmul.f32 1.442695, %v815_v44  ;;  %v893_v47 = vmul.f32 1.442695, %v817_v30  ;;  %v2819_v6 = vld [vmem:[#allocation16_spill] sm:$0xff] }
 0x28c   : > { %1591 = vpow2.f32 %v873_v14  ;;  %v801_v12 = vrot.slane %v800_v62, 2  ;;  %v829_v61 = vsub.f32 %v2158_v10, %v2341_v42  ;;  %v901_v63 = vmul.f32 1.442695, %v821_v41 }
 0x28d   : > { %1593 = vpow2.f32 %v877_v43  ;;  %v827_v43 = vsub.f32 %v2152_v8, %v2341_v42  ;;  %v897_v55 = vmul.f32 1.442695, %v819_v3  ;;  %v831_v30 = vsub.f32 %v2819_v6, %v2341_v42 }
 0x28e   : > { %1595 = vpow2.f32 %v881_v24  ;;  %v833_v2 = vsub.f32 %v2168_v15, %v2341_v42  ;;  %v802_v3 = vmax.f32 %v800_v62, %v801_v12  ;;  %v835_v10 = vsub.f32 %v2172_v17, %v2341_v42  ;;  %v2820_v62 = vld [vmem:[#allocation19_spill] sm:$0xff] }
 0x28f   : > { %1597 = vpow2.f32 %v885_v13  ;;  %v905_v13 = vmul.f32 1.442695, %v823_v23  ;;  %v913_v41 = vmul.f32 1.442695, %v827_v43  ;;  %v839_v15 = vsub.f32 %v2182_v22, %v2341_v42 }
 0x290   : > { %1599 = vpow2.f32 %v889_v37  ;;  %v921_v12 = vmul.f32 1.442695, %v831_v30  ;;  %v925_v17 = vmul.f32 1.442695, %v833_v2  ;;  %v845_v22 = vsub.f32 %v2200_v31, %v2341_v42 }
 0x291   : > { %v2362_v58 = vpop.eup %1589  ;;  %1601 = vpow2.f32 %v893_v47  ;;  %v917_v47 = vmul.f32 1.442695, %v829_v61  ;;  %v843_v61 = vsub.f32 %v2194_v28, %v2341_v42  ;;  %v849_v2 = vsub.f32 %v2216_v39, %v2341_v42 }
 0x292   : > { %2817 = vst [vmem:[#allocation21_spill] sm:$0xff] %v2362_v58  ;;  %v2366_v4 = vpop.eup %1591  ;;  %1603 = vpow2.f32 %v897_v55  ;;  %v803_v55 = vrot.slane %v802_v3, 1  ;;  %v865_v39 = vsub.f32 %v2292_v59, %v2341_v42 }
 0x293   : > { %2818 = vst [vmem:[#allocation23_spill] sm:$0xff] %v2366_v4  ;;  %v997_v14 = vadd.f32 %v2366_v4, %v2362_v58  ;;  %v2374_v44 = vpop.eup %1593  ;;  %v909_v4 = vmul.f32 1.442695, %v825_v5  ;;  %1605 = vpow2.f32 %v901_v63  ;;  %v841_v5 = vsub.f32 %v2820_v62, %v2341_v42 }
 0x294   : > { %v2381_v24 = vpop.eup %1595  ;;  %1607 = vpow2.f32 %v905_v13  ;;  %v929_v63 = vmul.f32 1.442695, %v835_v10 }
 0x295   : > { %v998_v21 = vadd.f32 %v2374_v44, %v997_v14  ;;  %v2388_v37 = vpop.eup %1597  ;;  %v837_v14 = vsub.f32 %v2176_v19, %v2341_v42  ;;  %1609 = vpow2.f32 %v909_v4  ;;  %v847_v4 = vsub.f32 %v2208_v35, %v2341_v42 }
 0x296   : > { %v2395_v6 = vpop.eup %1599  ;;  %1611 = vpow2.f32 %v913_v41  ;;  %v941_v10 = vmul.f32 1.442695, %v841_v5  ;;  %v2418_v41 = vmax.f32 %v802_v3, %v803_v55  ;;  %v945_v35 = vmul.f32 1.442695, %v843_v61 }
 0x297   : > { %v999_v8 = vadd.f32 %v2381_v24, %v998_v21  ;;  %v2402_v19 = vpop.eup %1601  ;;  %1613 = vpow2.f32 %v917_v47  ;;  %v933_v21 = vmul.f32 1.442695, %v837_v14  ;;  %v861_v47 = vsub.f32 %v2266_v1, %v2341_v42 }
 0x298   : > { %v2409_v30 = vpop.eup %1603  ;;  %1615 = vpow2.f32 %v921_v12  ;;  %v867_v3 = vsub.f32 %v2315_v60, %v2341_v42  ;;  %v953_v12 = vmul.f32 1.442695, %v847_v4  ;;  %v957_v1 = vmul.f32 1.442695, %v849_v2 }
 0x299   : > { %v1000_v23 = vadd.f32 %v2388_v37, %v999_v8  ;;  %v937_v8 = vmul.f32 1.442695, %v839_v15  ;;  %v2415_v28 = vpop.eup %1605  ;;  %1617 = vpow2.f32 %v925_v17  ;;  %v949_v15 = vmul.f32 1.442695, %v845_v22 }
 0x29a   : > { %v2420_v14 = vpop.eup %1607  ;;  %1619 = vpow2.f32 %v929_v63  ;;  %v806_v59 = vsub.f32 %v2192_v27, %v2418_v41  ;;  %v981_v61 = vmul.f32 1.442695, %v861_v47  ;;  %v2821_v63 = vld [vmem:[#allocation20_spill] sm:$0xff]  ;;  %v863_v60 = vsub.f32 %v2278_v34, %v2341_v42 }
 0x29b   : > { %v1001_v43 = vadd.f32 %v2395_v6, %v1000_v23  ;;  %v2424_v23 = vpop.eup %1609  ;;  %1621 = vpow2.f32 %v933_v21  ;;  %v808_v22 = vsub.f32 %v2821_v63, %v2418_v41  ;;  %v993_v27 = vmul.f32 1.442695, %v867_v3 }
 0x29c   : > { %v2429_v5 = vpop.eup %1611  ;;  %1623 = vpow2.f32 %v937_v8  ;;  %v2822_v8 = vld [vmem:[#allocation22_spill] sm:$0xff]  ;;  %v857_v47 = vsub.f32 %v2244_v53, %v2341_v42  ;;  %v871_v34 = vmul.f32 1.442695, %v806_v59  ;;  %v985_v63 = vmul.f32 1.442695, %v863_v60 }
 0x29d   : > { %v1002_v13 = vadd.f32 %v2402_v19, %v1001_v43  ;;  %v2433_v17 = vpop.eup %1613  ;;  %1625 = vpow2.f32 %v941_v10  ;;  %v810_v10 = vsub.f32 %v2822_v8, %v2418_v41  ;;  %v814_v59 = vsub.f32 %v2228_v45, %v2418_v41 }
 0x29e   : > { %v2438_v55 = vpop.eup %1615  ;;  %1627 = vpow2.f32 %v945_v35  ;;  %v973_v8 = vmul.f32 1.442695, %v857_v47  ;;  %v816_v60 = vsub.f32 %v2238_v50, %v2418_v41  ;;  %v855_v45 = vsub.f32 %v2236_v49, %v2341_v42  ;;  %v2824_v50 = vld [vmem:[#allocation26_spill] sm:$0xff] }
 0x29f   : > { %v1003_v31 = vadd.f32 %v2409_v30, %v1002_v13  ;;  %v2442_v21 = vpop.eup %1617  ;;  %1629 = vpow2.f32 %v949_v15  ;;  %v989_v13 = vmul.f32 1.442695, %v865_v39  ;;  %v2823_v39 = vld [vmem:[#allocation24_spill] sm:$0xff] }
 0x2a0   : > { %v2447_v2 = vpop.eup %1619  ;;  %1631 = vpow2.f32 %v953_v12  ;;  %v875_v12 = vmul.f32 1.442695, %v808_v22  ;;  %v853_v22 = vsub.f32 %v2230_v46, %v2341_v42  ;;  %v891_v58 = vmul.f32 1.442695, %v816_v60 }
 0x2a1   : > { %v1004_v62 = vadd.f32 %v2415_v28, %v1003_v31  ;;  %v2451_v31 = vpop.eup %1621  ;;  %1633 = vpow2.f32 %v957_v1 }
 0x2a2   : > { %v2456_v15 = vpop.eup %1623  ;;  %1635 = vpow2.f32 %v981_v61  ;;  %v879_v61 = vmul.f32 1.442695, %v810_v10 }
 0x2a3   : > { %v1005_v43 = vadd.f32 %v2420_v14, %v1004_v62  ;;  %v812_v62 = vsub.f32 %v2823_v39, %v2418_v41  ;;  %v2460_v3 = vpop.eup %1625  ;;  %1637 = vpow2.f32 %v989_v13 }
 0x2a4   : > { %v2465_v1 = vpop.eup %1627  ;;  %1639 = vpow2.f32 %v993_v27 }
 0x2a5   : > { %v1006_v4 = vadd.f32 %v2424_v23, %v1005_v43  ;;  %v859_v43 = vsub.f32 %v2252_v57, %v2341_v42  ;;  %1641 = vpow2.f32 %v871_v34  ;;  %v883_v13 = vmul.f32 1.442695, %v812_v62 }
 0x2a6   : > { %1643 = vpow2.f32 %v875_v12  ;;  %v887_v34 = vmul.f32 1.442695, %v814_v59  ;;  %v851_v62 = vsub.f32 %v2824_v50, %v2341_v42  ;;  %v965_v12 = vmul.f32 1.442695, %v853_v22 }
 0x2a7   : > { %v1007_v35 = vadd.f32 %v2429_v5, %v1006_v4  ;;  %v2469_v4 = vpop.eup %1629  ;;  %v977_v10 = vmul.f32 1.442695, %v859_v43  ;;  %1645 = vpow2.f32 %v985_v63  ;;  %v2825_v63 = vld [vmem:[#allocation30_spill] sm:$0xff]  ;;  %v1085_v42 = vpack.c.bf16 %v2447_v2, %v2442_v21 }
 0x2a8   : > { %v2474_v57 = vpop.eup %1631  ;;  %1647 = vpow2.f32 %v879_v61  ;;  %v822_v22 = vsub.f32 %v2276_v38, %v2418_v41 }
 0x2a9   : > { %v1008_v53 = vadd.f32 %v2433_v17, %v1007_v35  ;;  %v2478_v27 = vpop.eup %1633  ;;  %v818_v35 = vsub.f32 %v2246_v54, %v2418_v41  ;;  %1649 = vpow2.f32 %v973_v8  ;;  %v969_v54 = vmul.f32 1.442695, %v855_v45  ;;  %1127 = vmatpush.bf16.msra.mxu0 %v1085_v42 }
 0x2aa   : > { %v2483_v47 = vpop.eup %1635  ;;  %1651 = vpow2.f32 %v883_v13 }
 0x2ab   : > { %v1009_v39 = vadd.f32 %v2438_v55, %v1008_v53  ;;  %v2487_v53 = vpop.eup %1637  ;;  %1653 = vpow2.f32 %v977_v10  ;;  %v895_v8 = vmul.f32 1.442695, %v818_v35 }
 0x2ac   : > { %v2492_v43 = vpop.eup %1639  ;;  %1655 = vpow2.f32 %v887_v34 }
 0x2ad   : > { %v1010_v46 = vadd.f32 %v2442_v21, %v1009_v39  ;;  %v820_v39 = vsub.f32 %v2825_v63, %v2418_v41  ;;  %v2496_v52 = vpop.eup %1641  ;;  %v1101_v13 = vpack.c.bf16 %v2492_v43, %v2487_v53  ;;  %1657 = vpow2.f32 %v965_v12 }
 0x2ae   : > { %v2501_v61 = vpop.eup %1643  ;;  %1659 = vpow2.f32 %v891_v58  ;;  %v1083_v12 = vpack.c.bf16 %v2438_v55, %v2433_v17  ;;  %v826_v63 = vsub.f32 %v2150_v7, %v2418_v41  ;;  %v2827_v17 = vld [vmem:[#allocation15_spill] sm:$0xff]  ;;  %v830_v7 = vsub.f32 %v2160_v11, %v2418_v41 }
 0x2af   : > { %v1011_v49 = vadd.f32 %v2447_v2, %v1010_v46  ;;  %v2507_v60 = vpop.eup %1645  ;;  %v961_v46 = vmul.f32 1.442695, %v851_v62  ;;  %v1034_v10 = vadd.f32 %v2501_v61, %v2496_v52  ;;  %v2826_v2 = vld [vmem:[#allocation31_spill] sm:$0xff]  ;;  %v899_v35 = vmul.f32 1.442695, %v820_v39  ;;  %1146 = vmatpush.bf16.msra.mxu1 %v1101_v13 }
 0x2b0   : > { %v2512_v21 = vpop.eup %1647  ;;  %v824_v38 = vsub.f32 %v2826_v2, %v2418_v41  ;;  %1661 = vpow2.f32 %v969_v54  ;;  %v1099_v58 = vpack.c.bf16 %v2507_v60, %v2483_v47  ;;  %1128 = vmatpush.bf16.msra.mxu0 %v1083_v12  ;;  %v828_v55 = vsub.f32 %v2827_v17, %v2418_v41 }
 0x2b1   : > { %v1012_v59 = vadd.f32 %v2451_v31, %v1011_v49  ;;  %v2516_v34 = vpop.eup %1649  ;;  %v1035_v62 = vadd.f32 %v2512_v21, %v1034_v10  ;;  %1663 = vpow2.f32 %v895_v8  ;;  %v834_v12 = vsub.f32 %v2170_v16, %v2418_v41  ;;  %v2829_v16 = vld [vmem:[#allocation18_spill] sm:$0xff] }
 0x2b2   : > { %v2522_v49 = vpop.eup %1651  ;;  %1665 = vpow2.f32 %v961_v46  ;;  %v2828_v46 = vld [vmem:[#allocation17_spill] sm:$0xff]  ;;  %v911_v11 = vmul.f32 1.442695, %v826_v63  ;;  %v840_v63 = vsub.f32 %v2829_v16, %v2418_v41  ;;  %v915_v17 = vmul.f32 1.442695, %v828_v55 }
 0x2b3   : > { %v1013_v45 = vadd.f32 %v2456_v15, %v1012_v59  ;;  %v903_v59 = vmul.f32 1.442695, %v822_v22  ;;  %v2528_v39 = vpop.eup %1653  ;;  %v1036_v42 = vadd.f32 %v2522_v49, %v1035_v62  ;;  %1667 = vpow2.f32 %v899_v35  ;;  %1147 = vmatpush.bf16.msra.mxu1 %v1099_v58 }
 0x2b4   : > { %v2532_v13 = vpop.eup %1655  ;;  %v907_v22 = vmul.f32 1.442695, %v824_v38  ;;  %v832_v10 = vsub.f32 %v2828_v46, %v2418_v41  ;;  %v1097_v38 = vpack.c.bf16 %v2528_v39, %v2516_v34 }
 0x2b5   : > { %v1014_v50 = vadd.f32 %v2460_v3, %v1013_v45  ;;  %v1658_v8 = vpop.eup %1657  ;;  %v1037_v2 = vadd.f32 %v2532_v13, %v1036_v42  ;;  %1669 = vpow2.f32 %v903_v59  ;;  %v838_v42 = vsub.f32 %v2178_v20, %v2418_v41 }
 0x2b6   : > { %v2544_v62 = vpop.eup %1659  ;;  %v842_v59 = vsub.f32 %v2190_v26, %v2418_v41  ;;  %1671 = vpow2.f32 %v907_v22  ;;  %v919_v26 = vmul.f32 1.442695, %v830_v7 }
 0x2b7   : > { %v1015_v54 = vadd.f32 %v2465_v1, %v1014_v50  ;;  %v1081_v50 = vpack.c.bf16 %v2429_v5, %v2424_v23  ;;  %v1662_v35 = vpop.eup %1661  ;;  %v1038_v23 = vadd.f32 %v2544_v62, %v1037_v2  ;;  %1148 = vmatpush.bf16.msra.mxu1 %v1097_v38  ;;  %v1079_v2 = vpack.c.bf16 %v2420_v14, %v2415_v28 }
 0x2b8   : > { %v2556_v5 = vpop.eup %1663  ;;  %1673 = vpow2.f32 %v911_v11  ;;  %v1095_v55 = vpack.c.bf16 %v1662_v35, %v1658_v8  ;;  %v848_v38 = vsub.f32 %v2210_v36, %v2418_v41  ;;  %v866_v14 = vsub.f32 %v2325_v9, %v2418_v41 }
 0x2b9   : > { %v1016_v45 = vadd.f32 %v2469_v4, %v1015_v54  ;;  %v836_v54 = vsub.f32 %v2174_v18, %v2418_v41  ;;  %1129 = vmatpush.bf16.msra.mxu0 %v1081_v50  ;;  %v1039_v46 = vadd.f32 %v2556_v5, %v1038_v23  ;;  %1675 = vpow2.f32 %v915_v17 }
 0x2ba   : > { %v927_v11 = vmul.f32 1.442695, %v834_v12  ;;  %v868_v28 = vsub.f32 %v2337_v25, %v2418_v41  ;;  %1677 = vpow2.f32 %v919_v26  ;;  %v1087_v36 = vpack.c.bf16 %v2456_v15, %v2451_v31  ;;  %v1465_v15 = vld [vmem:[#allocation6 + $0x8] sm:$0xf0] }
 0x2bb   : > { %v1017_v58 = vadd.f32 %v2474_v57, %v1016_v45  ;;  %v1666_v45 = vpop.eup %1665  ;;  %1149 = vmatpush.bf16.msra.mxu1 %v1095_v55 }
 0x2bc   : > { %v2568_v50 = vpop.eup %1667  ;;  %v1093_v9 = vpack.c.bf16 %v1666_v45, %v2478_v27 }
 0x2bd   : > { %v1018_v18 = vadd.f32 %v2478_v27, %v1017_v58  ;;  %v923_v58 = vmul.f32 1.442695, %v832_v10  ;;  %v1040_v20 = vadd.f32 %v2568_v50, %v1039_v46  ;;  %1130 = vmatpush.bf16.msra.mxu0 %v1079_v2  ;;  %v2575_v23 = vpop.eup %1669  ;;  %v1077_v10 = vpack.c.bf16 %v2409_v30, %v2402_v19 }
 0x2be   : > { %v2584_v46 = vpop.eup %1671  ;;  %v862_v2 = vsub.f32 %v2282_v51, %v2418_v41  ;;  %v864_v19 = vsub.f32 %v2305_v33, %v2418_v41  ;;  %v939_v30 = vmul.f32 1.442695, %v840_v63  ;;  %v991_v51 = vmul.f32 1.442695, %v866_v14 }
 0x2bf   : > { %v1019_v22 = vadd.f32 %v1666_v45, %v1018_v18  ;;  %v931_v18 = vmul.f32 1.442695, %v836_v54  ;;  %v1041_v16 = vadd.f32 %v2575_v23, %v1040_v20  ;;  %1679 = vpow2.f32 %v923_v58  ;;  %v2592_v17 = vpop.eup %1673  ;;  %1150 = vmatpush.bf16.msra.mxu1 %v1093_v9  ;;  %v2830_v58 = vld [vmem:[#allocation29_spill] sm:$0xff]  ;;  %v2834_v9 = vld [vmem:[#allocation23_spill] sm:$0xff] }
 0x2c0   : > { %1681 = vpow2.f32 %v927_v11  ;;  %v854_v45 = vsub.f32 %v2234_v48, %v2418_v41  ;;  %v858_v33 = vsub.f32 %v2250_v56, %v2418_v41  ;;  %v995_v20 = vmul.f32 1.442695, %v868_v28 }
 0x2c1   : > { %v1020_v7 = vadd.f32 %v1658_v8, %v1019_v22  ;;  %v935_v8 = vmul.f32 1.442695, %v838_v42  ;;  %v1042_v54 = vadd.f32 %v2584_v46, %v1041_v16  ;;  %1131 = vmatpush.bf16.msra.mxu0 %v1077_v10  ;;  %1683 = vpow2.f32 %v931_v18  ;;  %v2600_v42 = vpop.eup %1675 }
 0x2c2   : > { %v1091_v63 = vpack.c.bf16 %v2474_v57, %v2469_v4  ;;  %v983_v16 = vmul.f32 1.442695, %v862_v2  ;;  %v943_v48 = vmul.f32 1.442695, %v842_v59  ;;  %v987_v55 = vmul.f32 1.442695, %v864_v19 }
 0x2c3   : > { %v1021_v12 = vadd.f32 %v1662_v35, %v1020_v7  ;;  %v1043_v27 = vadd.f32 %v2592_v17, %v1042_v54  ;;  %v1075_v35 = vpack.c.bf16 %v2395_v6, %v2388_v37  ;;  %1685 = vpow2.f32 %v935_v8  ;;  %v2610_v37 = vpop.eup %1677  ;;  %v2833_v2 = vld [vmem:[#allocation21_spill] sm:$0xff] }
 0x2c4   : > { %v860_v6 = vsub.f32 %v2264_v0, %v2418_v41  ;;  %1687 = vpow2.f32 %v939_v30  ;;  %1151 = vmatpush.bf16.msra.mxu1 %v1091_v63  ;;  %v856_v28 = vsub.f32 %v2830_v58, %v2418_v41  ;;  %v2831_v0 = vsub.f32 %v2196_v29, %v2418_v41  ;;  %v1463_v30 = vld [vmem:[#allocation6] sm:$0xf] }
 0x2c5   : > { %v1022_v25 = vadd.f32 %v2516_v34, %v1021_v12  ;;  %v1044_v26 = vadd.f32 %v2600_v42, %v1043_v27  ;;  %1132 = vmatpush.bf16.msra.mxu0 %v1075_v35  ;;  %v2614_v56 = vpop.eup %1679  ;;  %1689 = vpow2.f32 %v991_v51  ;;  %v1089_v14 = vpack.c.bf16 %v2465_v1, %v2460_v3  ;;  %v1496_v51 = vld [vmem:[#allocation6 + $0x4] sm:$0xf0]  ;;  %v2835_v35 = vld [vmem:[#allocation27_spill] sm:$0xff] }
 0x2c6   : > { %v1682_v22 = vpop.eup %1681  ;;  %v947_v59 = vmul.f32 1.442695, %v2831_v0  ;;  %1691 = vpow2.f32 %v995_v20  ;;  %v975_v7 = vmul.f32 1.442695, %v858_v33  ;;  %v955_v29 = vmul.f32 1.442695, %v848_v38 }
 0x2c7   : > { %v1023_v34 = vadd.f32 %v2528_v39, %v1022_v25  ;;  %v1045_v57 = vadd.f32 %v2610_v37, %v1044_v26  ;;  %v1073_v39 = vpack.c.bf16 %v2381_v24, %v2374_v44  ;;  %v1684_v11 = vpop.eup %1683  ;;  %1693 = vpow2.f32 %v983_v16  ;;  %v1495_v25 = vld [vmem:[#allocation6 + $0x4] sm:$0xf] }
 0x2c8   : > { %v2832_v44 = vsub.f32 %v2202_v32, %v2418_v41  ;;  %v979_v10 = vmul.f32 1.442695, %v860_v6  ;;  %1695 = vpow2.f32 %v987_v55  ;;  %1152 = vmatpush.bf16.msra.mxu1 %v1089_v14  ;;  %v1071_v12 = vpack.c.bf16 %v2834_v9, %v2833_v2  ;;  %v1473_v9 = vld [vmem:[#allocation6 + $0x18] sm:$0xf0] }
 0x2c9   : > { %v1024_v4 = vadd.f32 %v2483_v47, %v1023_v34  ;;  %v1046_v18 = vadd.f32 %v2614_v56, %v1045_v57  ;;  %1133 = vmatpush.bf16.msra.mxu0 %v1073_v39  ;;  %v2635_v3 = vpop.eup %1685  ;;  %1697 = vpow2.f32 %v943_v48  ;;  %v967_v32 = vmul.f32 1.442695, %v854_v45 }
 0x2ca   : > { %v951_v24 = vmul.f32 1.442695, %v2832_v44  ;;  %v2640_v8 = vpop.eup %1687  ;;  %1699 = vpow2.f32 %v947_v59  ;;  %v1086_v38 = vpack.c.bf16 %v1684_v11, %v1682_v22  ;;  %v852_v45 = vsub.f32 %v2835_v35, %v2418_v41 }
 0x2cb   : > { %v1025_v47 = vadd.f32 %v2507_v60, %v1024_v4  ;;  %v1047_v60 = vadd.f32 %v1682_v22, %v1046_v18  ;;  %v2644_v54 = vpop.eup %1689  ;;  %1701 = vpow2.f32 %v975_v7  ;;  %v971_v33 = vmul.f32 1.442695, %v856_v28 }
 0x2cc   : > { %v2649_v27 = vpop.eup %1691  ;;  %1703 = vpow2.f32 %v979_v10  ;;  %1153 = vmatpush.bf16.msra.mxu1 %v1087_v36  ;;  %v2653_v31 = vor.u32 %v1496_v51, %v1463_v30  ;;  %v2660_v34 = vor.u32 %v1495_v25, %v1465_v15  ;;  %v2836_v26 = vsub.f32 %v2218_v40, %v2418_v41  ;;  %v1497_v10 = vld [vmem:[#allocation6 + $0x14] sm:$0xf] }
 0x2cd   : > { %v1026_v1 = vadd.f32 %v2487_v53, %v1025_v47  ;;  %v1048_v53 = vadd.f32 %v1684_v11, %v1047_v60  ;;  %1134 = vmatpush.bf16.msra.mxu0 %v1071_v12  ;;  %1705 = vpow2.f32 %v951_v24  ;;  %v1102_v63 = vpack.c.bf16 %v2649_v27, %v2644_v54 }
 0x2ce   : > { %1707 = vpow2.f32 %v955_v29  ;;  %v959_v6 = vmul.f32 1.442695, %v2836_v26  ;;  %v1084_v48 = vpack.c.bf16 %v2614_v56, %v2610_v37  ;;  %v963_v39 = vmul.f32 1.442695, %v852_v45 }
 0x2cf   : > { %v2647_v19 = vadd.f32 %v2492_v43, %v1026_v1  ;;  %v2655_v43 = vpop.eup %1693  ;;  %v1049_v20 = vadd.f32 %v2635_v3, %v1048_v53  ;;  %1709 = vpow2.f32 %v967_v32  ;;  %1154 = vmatmul.bf16.vlgmr.msra.gmra.mxu1 %v2660_v34  ;;  %v1082_v37 = vpack.c.bf16 %v2600_v42, %v2592_v17  ;;  %v1471_v17 = vld [vmem:[#allocation6 + $0x10] sm:$0xf]  ;;  %v1498_v42 = vld [vmem:[#allocation6 + $0x14] sm:$0xf0] }
 0x2d0   : > { %v2662_v16 = vpop.eup %1695  ;;  %1135 = vmatmul.bf16.vlgmr.msra.gmra.mxu0 %v2653_v31  ;;  %1184 = vmatpush.bf16.msrb.mxu1 %v1102_v63  ;;  %1711 = vpow2.f32 %v971_v33  ;;  %v1080_v7 = vpack.c.bf16 %v2584_v46, %v2575_v23  ;;  %v1078_v60 = vpack.c.bf16 %v2568_v50, %v2556_v5  ;;  %v1472_v2 = vor.u32 %v1498_v42, %v1471_v17 }
 0x2d1   : > { %1165 = vmatpush.bf16.msrb.mxu0 %v1086_v38  ;;  %v1698_v55 = vpop.eup %1697  ;;  %v1050_v4 = vadd.f32 %v2640_v8, %v1049_v20  ;;  %v1100_v40 = vpack.c.bf16 %v2662_v16, %v2655_v43  ;;  %1713 = vpow2.f32 %v959_v6  ;;  %v1476_v32 = vor.u32 %v1497_v10, %v1473_v9 }
 0x2d2   : > { %v1700_v57 = vpop.eup %1699  ;;  %1715 = vpow2.f32 %v963_v39  ;;  %v1076_v36 = vpack.c.bf16 %v2544_v62, %v2532_v13  ;;  %v1074_v5 = vpack.c.bf16 %v2522_v49, %v2512_v21  ;;  %v1072_v35 = vpack.c.bf16 %v2501_v61, %v2496_v52 }
 0x2d3   : > { %v1702_v22 = vpop.eup %1701  ;;  %v1051_v58 = vadd.f32 %v1698_v55, %v1050_v4  ;;  %v1090_v25 = vpack.c.bf16 %v1700_v57, %v1698_v55  ;;  %v1088_v45 = vpack.c.bf16 %v2640_v8, %v2635_v3  ;;  %v1028_v52 = vrot.slane %v2647_v19, 4 }
 0x2d4   : > { %v1704_v41 = vpop.eup %1703  ;;  %1185 = vmatpush.bf16.msrb.mxu1 %v1100_v40 }
 0x2d5   : > { %1166 = vmatpush.bf16.msrb.mxu0 %v1084_v48  ;;  %v1706_v56 = vpop.eup %1705  ;;  %v1052_v28 = vadd.f32 %v1700_v57, %v1051_v58  ;;  %v1098_v11 = vpack.c.bf16 %v1704_v41, %v1702_v22  ;;  %v1029_v61 = vadd.f32 %v1028_v52, %v2647_v19  ;;  %v1219_v57 = vld [vmem:[%s2092_s15 + $0x10] sm:$0xff] }
 0x2d6   : > { %v1708_v0 = vpop.eup %1707 }
 0x2d7   : > { %v1710_v59 = vpop.eup %1709  ;;  %v1053_v14 = vadd.f32 %v1706_v56, %v1052_v28  ;;  %v1092_v30 = vpack.c.bf16 %v1708_v0, %v1706_v56  ;;  %v1030_v49 = vrot.slane %v1029_v61, 2  ;;  %v1221_v28 = vld [vmem:[%s2092_s15 + $0x20] sm:$0xff] }
 0x2d8   : > { %v1712_v47 = vpop.eup %1711  ;;  %1186 = vmatpush.bf16.msrb.mxu1 %v1098_v11 }
 0x2d9   : > { %1167 = vmatpush.bf16.msrb.mxu0 %v1082_v37  ;;  %v1054_v18 = vadd.f32 %v1708_v0, %v1053_v14  ;;  %v1714_v44 = vpop.eup %1713  ;;  %v1096_v29 = vpack.c.bf16 %v1712_v47, %v1710_v59  ;;  %v1031_v33 = vadd.f32 %v1030_v49, %v1029_v61 }
 0x2da   : > { %v1716_v1 = vpop.eup %1715 }
 0x2db   : > { %v1055_v24 = vadd.f32 %v1714_v44, %v1054_v18  ;;  %v1094_v46 = vpack.c.bf16 %v1716_v1, %v1714_v44  ;;  %v1223_v18 = vld [vmem:[%s2092_s15 + $0x30] sm:$0xff] }
 0x2dc   : > { %1187 = vmatpush.bf16.msrb.mxu1 %v1096_v29 }
 0x2dd   : > { %1168 = vmatpush.bf16.msrb.mxu0 %v1080_v7  ;;  %v1056_v12 = vadd.f32 %v1716_v1, %v1055_v24 }
 0x2df   : > { %v1057_v23 = vadd.f32 %v1710_v59, %v1056_v12  ;;  %1159 = vmatmul.bf16.gmra.mxu1 %v1476_v32 }
 0x2e0   : > { %1140 = vmatmul.bf16.gmra.mxu0 %v1472_v2  ;;  %1188 = vmatpush.bf16.msrb.mxu1 %v1094_v46  ;;  %v1220_v46 = vld [vmem:[%s2092_s15 + $0x18] sm:$0xff] }
 0x2e1   : > { %1169 = vmatpush.bf16.msrb.mxu0 %v1078_v60  ;;  %v1058_v38 = vadd.f32 %v1712_v47, %v1057_v23  ;;  %v1218_v60 = vld [vmem:[%s2092_s15 + $0x8] sm:$0xff] }
 0x2e3   : > { %v1059_v53 = vadd.f32 %v1702_v22, %v1058_v38 }
 0x2e4   : > { %1189 = vmatpush.bf16.msrb.mxu1 %v1092_v30 }
 0x2e5   : > { %1170 = vmatpush.bf16.msrb.mxu0 %v1076_v36  ;;  %v1060_v50 = vadd.f32 %v1704_v41, %v1059_v53 }
 0x2e7   : > { %v1061_v51 = vadd.f32 %v2655_v43, %v1060_v50  ;;  %v1222_v50 = vld [vmem:[%s2092_s15 + $0x28] sm:$0xff] }
 0x2e8   : > { %1190 = vmatpush.bf16.msrb.mxu1 %v1090_v25 }
 0x2e9   : > { %1171 = vmatpush.bf16.msrb.mxu0 %v1074_v5  ;;  %v1062_v13 = vadd.f32 %v2662_v16, %v1061_v51 }
 0x2eb   : > { %v1063_v62 = vadd.f32 %v2644_v54, %v1062_v13  ;;  %v1032_v54 = vrot.slane %v1031_v33, 1 }
 0x2ec   : > { %1191 = vmatpush.bf16.msrb.mxu1 %v1088_v45  ;;  %v1224_v45 = vld [vmem:[%s2092_s15 + $0x38] sm:$0xff] }
 0x2ed   : > { %1172 = vmatpush.bf16.msrb.mxu0 %v1072_v35  ;;  %v1064_v21 = vadd.f32 %v2649_v27, %v1063_v62  ;;  %v1033_v15 = vadd.f32 %v1032_v54, %v1031_v33  ;;  %v1206_v27 = vstv %s2696_s20 }
 0x2ef   : > { %1192 = vmatmul.bf16.vlgmr.msrb.gmra.mxu1 %v2660_v34  ;;  %1717 = vrcp.f32 %v1033_v15  ;;  %v1217_v34 = vld [vmem:[%s2092_s15] sm:$0xff] }
 0x2f0   : > { %1173 = vmatmul.bf16.vlgmr.msrb.gmra.mxu0 %v2653_v31  ;;  %v1065_v31 = vrot.slane %v1064_v21, 4 }
 0x2f2   : > { %v1066_v19 = vadd.f32 %v1065_v31, %v1064_v21 }
 0x2f4   : > { %v1067_v48 = vrot.slane %v1066_v19, 2 }
 0x2f5   : > { %v1718_v3 = vpop.eup %1717 }
 0x2f6   : > { %v1207_v63 = vmul.f32 %v1718_v3, %v1206_v27  ;;  %v1068_v22 = vadd.f32 %v1067_v48, %v1066_v19 }
 0x2f8   : > { %v1069_v41 = vrot.slane %v1068_v22, 1 }
 0x2fa   : > { %v1070_v59 = vadd.f32 %v1069_v41, %v1068_v22 }
 0x2fc   : > { %1719 = vrcp.f32 %v1070_v59 }
 0x2ff   : > { %1197 = vmatmul.bf16.gmra.mxu1 %v1476_v32 }
 0x300   : > { %1178 = vmatmul.bf16.gmra.mxu0 %v1472_v2 }
 0x302   : > { %v1720_v29 = vpop.eup %1719 }
 0x303   : > { %v1208_v1 = vmul.f32 %v1720_v29, %v1206_v27 }
 0x34c   : > { %v1155_v43 = vpop.f32.mrf.mxu1 }
 0x34d   : > { %v1136_v8 = vpop.f32.mrf.mxu0 }
 0x34e   : > { %v1156_v20 = vadd.f32 %v1155_v43, %v1136_v8 }
 0x350   : > { %v1209_v16 = vmul.f32 %v1207_v63, %v1156_v20 }
 0x352   : > { %v1225_v26 = vadd.f32 %v1217_v34, %v1209_v16 }
 0x354   : > { %1233 = vst [vmem:[%s2701_s0] sm:$0xff] %v1225_v26  ;;  %v1157_v55 = vpop.f32.mrf.mxu1 }
 0x355   : > { %v1138_v6 = vpop.f32.mrf.mxu0 }
 0x356   : > { %v1158_v4 = vadd.f32 %v1157_v55, %v1138_v6 }
 0x358   : > { %v1211_v39 = vmul.f32 %v1207_v63, %v1158_v4 }
 0x35a   : > { %v1227_v58 = vadd.f32 %v1219_v57, %v1211_v39 }
 0x35c   : > { %1235 = vst [vmem:[%s2701_s0 + $0x10] sm:$0xff] %v1227_v58  ;;  %v1160_v37 = vpop.f32.mrf.mxu1 }
 0x35d   : > { %v1141_v40 = vpop.f32.mrf.mxu0 }
 0x35e   : > { %v1161_v56 = vadd.f32 %v1160_v37, %v1141_v40 }
 0x360   : > { %v1213_v0 = vmul.f32 %v1207_v63, %v1161_v56 }
 0x362   : > { %v1229_v14 = vadd.f32 %v1221_v28, %v1213_v0 }
 0x364   : > { %1237 = vst [vmem:[%s2701_s0 + $0x20] sm:$0xff] %v1229_v14  ;;  %v1162_v47 = vpop.f32.mrf.mxu1 }
 0x365   : > { %v1143_v11 = vpop.f32.mrf.mxu0 }
 0x366   : > { %v1163_v7 = vadd.f32 %v1162_v47, %v1143_v11 }
 0x368   : > { %v1215_v44 = vmul.f32 %v1207_v63, %v1163_v7 }
 0x36a   : > { %v1231_v24 = vadd.f32 %v1223_v18, %v1215_v44 }
 0x36c   : > { %1239 = vst [vmem:[%s2701_s0 + $0x30] sm:$0xff] %v1231_v24  ;;  %v1193_v42 = vpop.f32.mrf.mxu1 }
 0x36d   : > { %v1174_v17 = vpop.f32.mrf.mxu0 }
 0x36e   : > { %v1194_v10 = vadd.f32 %v1193_v42, %v1174_v17 }
 0x370   : > { %v1210_v2 = vmul.f32 %v1208_v1, %v1194_v10 }
 0x372   : > { %v1226_v9 = vadd.f32 %v1218_v60, %v1210_v2 }
 0x374   : > { %1234 = vst [vmem:[%s2701_s0 + $0x8] sm:$0xff] %v1226_v9  ;;  %v1195_v32 = vpop.f32.mrf.mxu1 }
 0x375   : > { %v1176_v12 = vpop.f32.mrf.mxu0 }
 0x376   : > { %v1196_v23 = vadd.f32 %v1195_v32, %v1176_v12 }
 0x378   : > { %v1212_v36 = vmul.f32 %v1208_v1, %v1196_v23 }
 0x37a   : > { %v1228_v38 = vadd.f32 %v1220_v46, %v1212_v36 }
 0x37c   : > { %1236 = vst [vmem:[%s2701_s0 + $0x18] sm:$0xff] %v1228_v38  ;;  %v1198_v30 = vpop.f32.mrf.mxu1 }
 0x37d   : > { %v1179_v53 = vpop.f32.mrf.mxu0 }
 0x37e   : > { %v1199_v5 = vadd.f32 %v1198_v30, %v1179_v53 }
 0x380   : > { %v1214_v51 = vmul.f32 %v1208_v1, %v1199_v5 }
 0x382   : > { %v1230_v25 = vadd.f32 %v1222_v50, %v1214_v51 }
 0x384   : > { %1238 = vst [vmem:[%s2701_s0 + $0x28] sm:$0xff] %v1230_v25  ;;  %v1200_v13 = vpop.f32.mrf.mxu1 }
 0x385   : > { %v1181_v35 = vpop.f32.mrf.mxu0 }
 0x386   : > { %v1201_v62 = vadd.f32 %v1200_v13, %v1181_v35 }
 0x388   : > { %v1216_v21 = vmul.f32 %v1208_v1, %v1201_v62 }
 0x38a   : > { %v1232_v52 = vadd.f32 %v1224_v45, %v1216_v21 }
 0x38c   : > { %1240 = vst [vmem:[%s2701_s0 + $0x38] sm:$0xff] %v1232_v52 }
 0x38d   : > { %1838 = shalt.err (!%p1835_p0)
}
 0x38e   : > { %s1910_s1 = smov 256   ;;  %s1911_s12 = smov 16  }
 0x38f   : > { %1510 = dma.vmem_to_hbm [thread:$0]  (%p2056_p5), %s1257_s16, 1024, %s1259_s8, %s1242_s26, %s1910_s1, %s1910_s1, %s1911_s12  }
 0x390 PF: > { %s1273_s14 = sand.u32 1, %s1881_s23   ;;  %p1524_p3 = pnand %p1378_p11, %p1993_p6 }
 0x391   : > { %s1274_s20 = scalar_lea.sflag [#allocation5], %s1273_s14 }
 0x392   : > { %p1525_p1 = pneg %p1524_p3 }
 0x394   : > { %1876 = dma.done.wait (%p1525_p1), %s1274_s20, 1024  }
 0x395   : > { %1878 = vsyncadd (%p1525_p1), %s1274_s20, 4294966272  ;;  %s22_s28 = sadd.s32 1, %s1901_s28   ;;  %s2837_s18 = sld [smem:[#allocation14_spill]] }
 0x396   : > { %p19_p10 = scmp.ge.s32.totalorder %s22_s28, 4   ;;  %s2838_s23 = smov %s1885_s24 }
 0x397   : > { %s2839_s24 = smov %s1889_s25  ;;  %s2840_s25 = smov %s2066_s29 }
 0x398   : > { %s2841_s26 = smov %s1897_s27  ;;  %21 = sbr.rel (!%p19_p10) target bundleno = 10 (0xa), region = 99 }
 0x39b   : > { %s2842_s27 = smov %s2837_s18 }
 0x39d   :  { %1280 = vsyncpa [#allocation4], 1 }
 0x39e   :  { %1282 = vsyncpa [#allocation4 + $0x1], 1 }
 0x39f   :  { %1283 = vsyncpa [#allocation7], 1 }
 0x3a0   :  { %1284 = vsyncpa [#allocation5], 1 }
 0x3a1   :  { %1286 = vsyncpa [#allocation5 + $0x1], 1 }

</bundles_post_ra>
